<compile_context>
chip_gen: v7x
topology: tpu7x:2x2x1
jax: 0.10.0
libtpu: 0.0.40
codegen_flags: <defaults>
</compile_context>

<pallas_src>
import functools

import jax
import jax.numpy as jnp
from jax.experimental import pallas as pl
from jax.experimental.pallas import tpu as pltpu


# ----------------------------------------------------------------------------
# tanh-GELU (EUP tanh; difference to exact erf-GELU is <~1e-3, inside tolerance)
# ----------------------------------------------------------------------------
def _gelu_tanh(x):
    c = 0.7978845608028654  # sqrt(2/pi)
    return 0.5 * x * (1.0 + jnp.tanh(c * (x + 0.044715 * (x * x * x))))


# ----------------------------------------------------------------------------
# the fused Pallas kernel (one batch image per grid step)
# ----------------------------------------------------------------------------
def _attention_fused_kernel(x_ref, l_ref, r_ref, bias_ref,
                            wc_ref, bc_ref, w1_ref, b1_ref, w2_ref, b2_ref,
                            o_ref, x2_scr, a2_scr):
    """x: (1,C,H,W) f32; l: (3,C,H,H) bf16; r: (3,C,W,W) bf16; bias: (C,H,W) f32;
       wc/w1/w2: (C,C) bf16; bc/b1/b2: (C,1) f32; o: (1,C,H*W) f32;
       x2_scr/a2_scr: (C,H*W) f32 VMEM bridges."""
    H, W = x_ref.shape[2], x_ref.shape[3]

    x = x_ref[0]                                   # (C, H, W) f32
    xb = x.astype(jnp.bfloat16)

    # ---- LKC depthwise chain: attn_dw[c] = bias[c] + sum_j L[j,c] @ X[c] @ R[j,c] ----
    acc = bias_ref[...]                            # (C, H, W) f32
    for j in range(3):                             # static unroll over folded conv0 column offsets
        t = jnp.einsum('chk,ckw->chw', l_ref[j], xb,
                       preferred_element_type=jnp.float32)          # L[j,c] @ X[c]
        acc = acc + jnp.einsum('chk,ckw->chw', t.astype(jnp.bfloat16), r_ref[j],
                               preferred_element_type=jnp.float32)  # (...) @ R[j,c]

    # ---- reshape-free bridge (C,H,W) -> lane-dense (C,H*W): per-row scatter into VMEM ----
    for h in range(H):                             # static unroll; VMEM-only traffic
        x2_scr[:, pl.ds(h * W, W)] = x[:, h, :]
        a2_scr[:, pl.ds(h * W, W)] = acc[:, h, :]
    x2 = x2_scr[...]                               # (C, H*W) f32 (also the residual)
    a2 = a2_scr[...]                               # (C, H*W) f32

    # ---- conv1(attn_dw) ; GELU(proj_1(x)) * attn ; proj_2 ; + residual (lane-dense) ----
    attn = jnp.dot(wc_ref[...], a2.astype(jnp.bfloat16),
                   preferred_element_type=jnp.float32) + bc_ref[...]
    h1 = jnp.dot(w1_ref[...], x2.astype(jnp.bfloat16),
                 preferred_element_type=jnp.float32) + b1_ref[...]
    g = _gelu_tanh(h1) * attn                      # f32 elementwise epilogue
    y = jnp.dot(w2_ref[...], g.astype(jnp.bfloat16),
                preferred_element_type=jnp.float32) + b2_ref[...]
    o_ref[0] = y + x2


# ----------------------------------------------------------------------------
# wrapper-side operator construction (weight prep, batch-independent)
# ----------------------------------------------------------------------------
def interp1d_align_corners(w, out_len):
    """F.interpolate(..., mode='bilinear', align_corners=True) along the last axis."""
    in_len = w.shape[-1]
    if in_len == 1:
        return jnp.broadcast_to(w, w.shape[:-1] + (out_len,))
    if out_len == 1:
        return w[..., :1]
    pos = jnp.arange(out_len, dtype=jnp.float32) * ((in_len - 1) / (out_len - 1))
    lo = jnp.clip(jnp.floor(pos).astype(jnp.int32), 0, in_len - 2)
    frac = pos - lo.astype(jnp.float32)
    return jnp.take(w, lo, axis=-1) * (1.0 - frac) + jnp.take(w, lo + 1, axis=-1) * frac


def _toeplitz(taps, length):
    """'same'-padded depthwise conv (odd kernel) along one axis as a (C, L, L) matrix.

    M[c, i, j] = taps[c, j - i + P] with P = (K-1)//2 (zero outside support), so out = M @ x
    applies the conv along the row axis.  Column-axis application uses transpose(M, (0,2,1)).
    NOTE: assumes odd K (3 and 2H-1 / 2W-1 here, always odd).
    """
    K = taps.shape[-1]
    P = (K - 1) // 2
    delta = jnp.arange(length)[None, :] - jnp.arange(length)[:, None] + P   # (L, L)
    valid = (delta >= 0) & (delta < K)
    gathered = taps[:, jnp.clip(delta, 0, K - 1)]
    return jnp.where(valid[None, :, :], gathered, 0.0).astype(jnp.float32)


def _build_lkc_operators(p, C, H, W, ld, gd):
    """Fold conv0 + (local|global) separable depthwise convs (+ biases) into L/R/bias."""
    w0 = p["conv0_w"][:, 0].astype(jnp.float32)          # (C, 3, 3)
    b0 = p["conv0_b"].astype(jnp.float32)                # (C,)

    bh_parts, bw_parts, bhb_parts, bwb_parts = [], [], [], []
    if ld > 0:   # SpatialConv2d(local_dim, 3): (3,1) then (1,3), depthwise
        bh_parts.append(_toeplitz(p["lc_h_w"][:, 0, :, 0], H))
        bw_parts.append(jnp.transpose(_toeplitz(p["lc_w_w"][:, 0, 0, :], W), (0, 2, 1)))
        bhb_parts.append(p["lc_h_b"])
        bwb_parts.append(p["lc_w_b"])
    if gd > 0:   # OversizeConv2d: bilinear-resized taps (2H-1)/(2W-1), depthwise
        hk = interp1d_align_corners(p["g_h_w"][:, 0, :, 0], 2 * H - 1)    # (gd, 2H-1)
        wk = interp1d_align_corners(p["g_w_w"][:, 0, 0, :], 2 * W - 1)    # (gd, 2W-1)
        bh_parts.append(_toeplitz(hk, H))
        bw_parts.append(jnp.transpose(_toeplitz(wk, W), (0, 2, 1)))
        bhb_parts.append(p["g_h_b"])
        bwb_parts.append(p["g_w_b"])

    BH = jnp.concatenate(bh_parts, axis=0)               # (C, H, H)  per-channel branch H-op
    BW = jnp.concatenate(bw_parts, axis=0)               # (C, W, W)  per-channel branch W-op
    bh_bias = jnp.concatenate(bhb_parts, axis=0).astype(jnp.float32)
    bw_bias = jnp.concatenate(bwb_parts, axis=0).astype(jnp.float32)

    # conv0 = sum_j A_j X S_j + b0: A_j = row-Toeplitz of column j of the 3x3 kernel,
    # S_j = column shift by (j-1).
    A = jnp.stack([_toeplitz(w0[:, :, j], H) for j in range(3)], axis=0)          # (3, C, H, H)
    S = jnp.stack([jnp.eye(W, k=1 - j, dtype=jnp.float32) for j in range(3)], 0)  # (3, W, W)

    lmat = jnp.einsum('chk,jckm->jchm', BH, A)            # L[j,c] = BH[c] @ A[j,c]
    rmat = jnp.einsum('jkm,cmw->jckw', S, BW)             # R[j,c] = S[j]  @ BW[c]

    # bias field = BH (b0*1) BW + (bh*1) BW + bw*1   (edge effects included)
    a_bias = jnp.broadcast_to(b0[:, None, None], (C, H, W)).astype(jnp.float32)
    u_bias = jnp.einsum('chk,ckw->chw', BH, a_bias) + bh_bias[:, None, None]
    bias_field = jnp.einsum('chk,ckw->chw', u_bias, BW) + bw_bias[:, None, None]
    return lmat, rmat, bias_field


# ----------------------------------------------------------------------------
# full Attention forward (fused Pallas path)
# ----------------------------------------------------------------------------
def attention_pallas(x_nchw, p, ld, gd):
    B, C, H, W = x_nchw.shape
    HW = H * W
    x = x_nchw.astype(jnp.float32)

    lmat, rmat, bias_field = _build_lkc_operators(p, C, H, W, ld, gd)
    lmat = lmat.astype(jnp.bfloat16)                      # (3, C, H, H)
    rmat = rmat.astype(jnp.bfloat16)                      # (3, C, W, W)

    wc = p["conv1_w"][:, :, 0, 0].astype(jnp.bfloat16)    # (C, C)
    w1 = p["proj1_w"][:, :, 0, 0].astype(jnp.bfloat16)
    w2 = p["proj2_w"][:, :, 0, 0].astype(jnp.bfloat16)
    bc = p["conv1_b"].reshape(C, 1).astype(jnp.float32)
    b1 = p["proj1_b"].reshape(C, 1).astype(jnp.float32)
    b2 = p["proj2_b"].reshape(C, 1).astype(jnp.float32)

    # constant operands: never change across the grid -> single buffer (no 2x VMEM)
    const = dict(pipeline_mode=pl.Buffered(1))

    # VMEM budget: double-buffered x/out blocks + single-buffered constants + bridge
    # scratches + a handful of live f32 (C, H*W) intermediates; clamp with headroom
    # (v7x physical VMEM is 64 MiB).
    est = (2 * 2 * C * HW * 4                      # x block + out block, double-buffered
           + lmat.size * 2 + rmat.size * 2 + bias_field.size * 4
           + 3 * C * C * 2 + 3 * C * 4             # weights + biases
           + 2 * C * HW * 4                        # bridge scratches
           + 8 * C * HW * 4)                       # live f32 intermediates / casts
    vmem_limit = int(min(max(2 * est, 32 * 1024 * 1024), 56 * 1024 * 1024))

    out3 = pl.pallas_call(
        _attention_fused_kernel,
        grid=(B,),
        in_specs=[
            pl.BlockSpec((1, C, H, W), lambda b: (b, 0, 0, 0)),
            pl.BlockSpec((3, C, H, H), lambda b: (0, 0, 0, 0), **const),
            pl.BlockSpec((3, C, W, W), lambda b: (0, 0, 0, 0), **const),
            pl.BlockSpec((C, H, W), lambda b: (0, 0, 0), **const),
            pl.BlockSpec((C, C), lambda b: (0, 0), **const),
            pl.BlockSpec((C, 1), lambda b: (0, 0), **const),
            pl.BlockSpec((C, C), lambda b: (0, 0), **const),
            pl.BlockSpec((C, 1), lambda b: (0, 0), **const),
            pl.BlockSpec((C, C), lambda b: (0, 0), **const),
            pl.BlockSpec((C, 1), lambda b: (0, 0), **const),
        ],
        out_specs=pl.BlockSpec((1, C, HW), lambda b: (b, 0, 0)),
        out_shape=jax.ShapeDtypeStruct((B, C, HW), jnp.float32),
        scratch_shapes=[pltpu.VMEM((C, HW), jnp.float32),   # x bridge
                        pltpu.VMEM((C, HW), jnp.float32)],  # attn_dw bridge
        compiler_params=pltpu.CompilerParams(
            dimension_semantics=("parallel",),     # B>=2 keeps both v7x TensorCores busy
            vmem_limit_bytes=vmem_limit),
    )(x, lmat, rmat, bias_field, wc, bc, w1, b1, w2, b2)

    return out3.reshape(B, C, H, W)                # free reshape (same NCHW memory)


# ----------------------------------------------------------------------------
# pure-JAX reference (NCHW, mirrors the PyTorch module) for the correctness check
# ----------------------------------------------------------------------------
def _conv_ref(x, w, b, padding, groups):
    out = jax.lax.conv_general_dilated(
        x, w, window_strides=(1, 1),
        padding=[(padding[0], padding[0]), (padding[1], padding[1])],
        dimension_numbers=("NCHW", "OIHW", "NCHW"),
        feature_group_count=groups,
        precision=jax.lax.Precision.HIGHEST)
    return out + b[None, :, None, None]


def attention_ref(x, p, H, W, ld, gd):
    d = x.shape[1]
    attn = _conv_ref(x, p["conv0_w"], p["conv0_b"], (1, 1), d)
    local, glob = attn[:, :ld], attn[:, ld:]
    if ld > 0:
        local = _conv_ref(local, p["lc_h_w"], p["lc_h_b"], (1, 0), ld)
        local = _conv_ref(local, p["lc_w_w"], p["lc_w_b"], (0, 1), ld)
    if gd > 0:
        hk = interp1d_align_corners(p["g_h_w"][:, 0, :, 0], 2 * H - 1)[:, None, :, None]
        glob = _conv_ref(glob, hk, p["g_h_b"], (H - 1, 0), gd)
        wk = interp1d_align_corners(p["g_w_w"][:, 0, 0, :], 2 * W - 1)[:, None, None, :]
        glob = _conv_ref(glob, wk, p["g_w_b"], (0, W - 1), gd)
    attn = jnp.concatenate([local, glob], axis=1) if (ld > 0 and gd > 0) else (local if ld > 0 else glob)
    attn = _conv_ref(attn, p["conv1_w"], p["conv1_b"], (0, 0), 1)

    h = _conv_ref(x, p["proj1_w"], p["proj1_b"], (0, 0), 1)
    h = jax.nn.gelu(h, approximate=False)
    h = h * attn
    y = _conv_ref(h, p["proj2_w"], p["proj2_b"], (0, 0), 1)
    return y + x


# ----------------------------------------------------------------------------
# deterministic parameter init (shapes follow the PyTorch module's __init__)
# ----------------------------------------------------------------------------
def init_params(key, d, kernel_size, ld, gd):
    shapes = {
        "proj1_w": (d, d, 1, 1), "proj1_b": (d,),
        "proj2_w": (d, d, 1, 1), "proj2_b": (d,),
        "conv0_w": (d, 1, 3, 3), "conv0_b": (d,),
        "conv1_w": (d, d, 1, 1), "conv1_b": (d,),
        "lc_h_w": (ld, 1, 3, 1), "lc_h_b": (ld,),
        "lc_w_w": (ld, 1, 1, 3), "lc_w_b": (ld,),
        "g_h_w": (gd, 1, kernel_size, 1), "g_h_b": (gd,),
        "g_w_w": (gd, 1, 1, kernel_size), "g_w_b": (gd,),
    }
    keys = jax.random.split(key, len(shapes))
    return {name: (0.3 if name.endswith("_w") else 0.1)
            * jax.random.normal(k, shape, dtype=jnp.float32)
            for (name, shape), k in zip(shapes.items(), keys)}


if __name__ == "__main__":
    d_model, kernel_size, ratio = 8, 7, 0.5
    B, H, W = 2, 16, 16
    gd = int(round(ratio * d_model))
    ld = d_model - gd

    key = jax.random.PRNGKey(0)
    kx, kp = jax.random.split(key)
    params = init_params(kp, d_model, kernel_size, ld, gd)
    x = jax.random.normal(kx, (B, d_model, H, W), dtype=jnp.float32)

    fwd = jax.jit(functools.partial(attention_pallas, ld=ld, gd=gd))
    out = jax.block_until_ready(fwd(x, params))
    assert out.shape == x.shape

    ref = attention_ref(x, params, H, W, ld, gd)
    err = float(jnp.max(jnp.abs(out - ref)))
    scale = float(jnp.max(jnp.abs(ref)))
    # bf16 matmul operands end-to-end + tanh-GELU -> a few % relative error is expected.
    assert err <= 3e-2 * max(1.0, scale), f"mismatch: max abs err {err} (scale {scale})"
    print("KERNEL_OK")
</pallas_src>

<mosaic_0001>
module attributes {stable_mosaic.version = 11 : i64} {
  func.func @_attention_fused_kernel(%arg0: i32, %arg1: memref<1x8x16x16xf32, #tpu.memory_space<vmem>>, %arg2: memref<3x8x16x16xbf16, #tpu.memory_space<vmem>>, %arg3: memref<3x8x16x16xbf16, #tpu.memory_space<vmem>>, %arg4: memref<8x16x16xf32, #tpu.memory_space<vmem>>, %arg5: memref<8x8xbf16, #tpu.memory_space<vmem>>, %arg6: memref<8x1xf32, #tpu.memory_space<vmem>>, %arg7: memref<8x8xbf16, #tpu.memory_space<vmem>>, %arg8: memref<8x1xf32, #tpu.memory_space<vmem>>, %arg9: memref<8x8xbf16, #tpu.memory_space<vmem>>, %arg10: memref<8x1xf32, #tpu.memory_space<vmem>>, %arg11: memref<1x8x256xf32, #tpu.memory_space<vmem>>, %arg12: memref<8x256xf32, #tpu.memory_space<vmem>>, %arg13: memref<8x256xf32, #tpu.memory_space<vmem>>) attributes {dimension_semantics = [#tpu.dimension_semantics<parallel>], iteration_bounds = array<i64: 2>, scalar_prefetch = 0 : i64, scratch_operands = 2 : i64, tpu.core_type = #tpu.core_type<tc>, window_params = [{transform_indices = @transform_0, window_bounds = array<i64: 1, 8, 16, 16>}, {pipeline_mode = #tpu.pipeline_mode<synchronous>, transform_indices = @transform_1, window_bounds = array<i64: 3, 8, 16, 16>}, {pipeline_mode = #tpu.pipeline_mode<synchronous>, transform_indices = @transform_2, window_bounds = array<i64: 3, 8, 16, 16>}, {pipeline_mode = #tpu.pipeline_mode<synchronous>, transform_indices = @transform_3, window_bounds = array<i64: 8, 16, 16>}, {pipeline_mode = #tpu.pipeline_mode<synchronous>, transform_indices = @transform_4, window_bounds = array<i64: 8, 8>}, {pipeline_mode = #tpu.pipeline_mode<synchronous>, transform_indices = @transform_5, window_bounds = array<i64: 8, 1>}, {pipeline_mode = #tpu.pipeline_mode<synchronous>, transform_indices = @transform_6, window_bounds = array<i64: 8, 8>}, {pipeline_mode = #tpu.pipeline_mode<synchronous>, transform_indices = @transform_7, window_bounds = array<i64: 8, 1>}, {pipeline_mode = #tpu.pipeline_mode<synchronous>, transform_indices = @transform_8, window_bounds = array<i64: 8, 8>}, {pipeline_mode = #tpu.pipeline_mode<synchronous>, transform_indices = @transform_9, window_bounds = array<i64: 8, 1>}, {transform_indices = @transform_10, window_bounds = array<i64: 1, 8, 256>}]} {
    %c0 = arith.constant 0 : index
    %c0_0 = arith.constant 0 : index
    %c0_1 = arith.constant 0 : index
    %c0_2 = arith.constant 0 : index
    %0 = vector.load %arg1[%c0, %c0_0, %c0_1, %c0_2] : memref<1x8x16x16xf32, #tpu.memory_space<vmem>>, vector<1x8x16x16xf32>
    %1 = vector.shape_cast %0 : vector<1x8x16x16xf32> to vector<8x16x16xf32>
    %2 = arith.truncf %1 : vector<8x16x16xf32> to vector<8x16x16xbf16>
    %c0_3 = arith.constant 0 : index
    %c0_4 = arith.constant 0 : index
    %c0_5 = arith.constant 0 : index
    %3 = vector.load %arg4[%c0_3, %c0_4, %c0_5] : memref<8x16x16xf32, #tpu.memory_space<vmem>>, vector<8x16x16xf32>
    %c0_6 = arith.constant 0 : index
    %c0_7 = arith.constant 0 : index
    %c0_8 = arith.constant 0 : index
    %c0_9 = arith.constant 0 : index
    %4 = vector.load %arg2[%c0_6, %c0_7, %c0_8, %c0_9] : memref<3x8x16x16xbf16, #tpu.memory_space<vmem>>, vector<1x8x16x16xbf16>
    %5 = vector.shape_cast %4 : vector<1x8x16x16xbf16> to vector<8x16x16xbf16>
    "tpu.trace_start"() <{level = 10 : i32, message = "chk,ckw->chw"}> : () -> ()
    %cst = arith.constant dense<0.000000e+00> : vector<8x16x16xf32>
    %6 = tpu.matmul %5, %2, %cst {dimension_numbers = #tpu.dot_dimension_numbers<[2], [1], [1], [2], [0, 0, 0, 1, 1, 2], [0], [0]>} : vector<8x16x16xbf16>, vector<8x16x16xbf16>, vector<8x16x16xf32> -> vector<8x16x16xf32>
    "tpu.trace_stop"() : () -> ()
    %7 = arith.truncf %6 : vector<8x16x16xf32> to vector<8x16x16xbf16>
    %c0_10 = arith.constant 0 : index
    %c0_11 = arith.constant 0 : index
    %c0_12 = arith.constant 0 : index
    %c0_13 = arith.constant 0 : index
    %8 = vector.load %arg3[%c0_10, %c0_11, %c0_12, %c0_13] : memref<3x8x16x16xbf16, #tpu.memory_space<vmem>>, vector<1x8x16x16xbf16>
    %9 = vector.shape_cast %8 : vector<1x8x16x16xbf16> to vector<8x16x16xbf16>
    "tpu.trace_start"() <{level = 10 : i32, message = "chk,ckw->chw"}> : () -> ()
    %cst_14 = arith.constant dense<0.000000e+00> : vector<8x16x16xf32>
    %10 = tpu.matmul %7, %9, %cst_14 {dimension_numbers = #tpu.dot_dimension_numbers<[2], [1], [1], [2], [0, 0, 0, 1, 1, 2], [0], [0]>} : vector<8x16x16xbf16>, vector<8x16x16xbf16>, vector<8x16x16xf32> -> vector<8x16x16xf32>
    "tpu.trace_stop"() : () -> ()
    %11 = arith.addf %3, %10 : vector<8x16x16xf32>
    %c1 = arith.constant 1 : index
    %c0_15 = arith.constant 0 : index
    %c0_16 = arith.constant 0 : index
    %c0_17 = arith.constant 0 : index
    %12 = vector.load %arg2[%c1, %c0_15, %c0_16, %c0_17] : memref<3x8x16x16xbf16, #tpu.memory_space<vmem>>, vector<1x8x16x16xbf16>
    %13 = vector.shape_cast %12 : vector<1x8x16x16xbf16> to vector<8x16x16xbf16>
    "tpu.trace_start"() <{level = 10 : i32, message = "chk,ckw->chw"}> : () -> ()
    %cst_18 = arith.constant dense<0.000000e+00> : vector<8x16x16xf32>
    %14 = tpu.matmul %13, %2, %cst_18 {dimension_numbers = #tpu.dot_dimension_numbers<[2], [1], [1], [2], [0, 0, 0, 1, 1, 2], [0], [0]>} : vector<8x16x16xbf16>, vector<8x16x16xbf16>, vector<8x16x16xf32> -> vector<8x16x16xf32>
    "tpu.trace_stop"() : () -> ()
    %15 = arith.truncf %14 : vector<8x16x16xf32> to vector<8x16x16xbf16>
    %c1_19 = arith.constant 1 : index
    %c0_20 = arith.constant 0 : index
    %c0_21 = arith.constant 0 : index
    %c0_22 = arith.constant 0 : index
    %16 = vector.load %arg3[%c1_19, %c0_20, %c0_21, %c0_22] : memref<3x8x16x16xbf16, #tpu.memory_space<vmem>>, vector<1x8x16x16xbf16>
    %17 = vector.shape_cast %16 : vector<1x8x16x16xbf16> to vector<8x16x16xbf16>
    "tpu.trace_start"() <{level = 10 : i32, message = "chk,ckw->chw"}> : () -> ()
    %cst_23 = arith.constant dense<0.000000e+00> : vector<8x16x16xf32>
    %18 = tpu.matmul %15, %17, %cst_23 {dimension_numbers = #tpu.dot_dimension_numbers<[2], [1], [1], [2], [0, 0, 0, 1, 1, 2], [0], [0]>} : vector<8x16x16xbf16>, vector<8x16x16xbf16>, vector<8x16x16xf32> -> vector<8x16x16xf32>
    "tpu.trace_stop"() : () -> ()
    %19 = arith.addf %11, %18 : vector<8x16x16xf32>
    %c2 = arith.constant 2 : index
    %c0_24 = arith.constant 0 : index
    %c0_25 = arith.constant 0 : index
    %c0_26 = arith.constant 0 : index
    %20 = vector.load %arg2[%c2, %c0_24, %c0_25, %c0_26] : memref<3x8x16x16xbf16, #tpu.memory_space<vmem>>, vector<1x8x16x16xbf16>
    %21 = vector.shape_cast %20 : vector<1x8x16x16xbf16> to vector<8x16x16xbf16>
    "tpu.trace_start"() <{level = 10 : i32, message = "chk,ckw->chw"}> : () -> ()
    %cst_27 = arith.constant dense<0.000000e+00> : vector<8x16x16xf32>
    %22 = tpu.matmul %21, %2, %cst_27 {dimension_numbers = #tpu.dot_dimension_numbers<[2], [1], [1], [2], [0, 0, 0, 1, 1, 2], [0], [0]>} : vector<8x16x16xbf16>, vector<8x16x16xbf16>, vector<8x16x16xf32> -> vector<8x16x16xf32>
    "tpu.trace_stop"() : () -> ()
    %23 = arith.truncf %22 : vector<8x16x16xf32> to vector<8x16x16xbf16>
    %c2_28 = arith.constant 2 : index
    %c0_29 = arith.constant 0 : index
    %c0_30 = arith.constant 0 : index
    %c0_31 = arith.constant 0 : index
    %24 = vector.load %arg3[%c2_28, %c0_29, %c0_30, %c0_31] : memref<3x8x16x16xbf16, #tpu.memory_space<vmem>>, vector<1x8x16x16xbf16>
    %25 = vector.shape_cast %24 : vector<1x8x16x16xbf16> to vector<8x16x16xbf16>
    "tpu.trace_start"() <{level = 10 : i32, message = "chk,ckw->chw"}> : () -> ()
    %cst_32 = arith.constant dense<0.000000e+00> : vector<8x16x16xf32>
    %26 = tpu.matmul %23, %25, %cst_32 {dimension_numbers = #tpu.dot_dimension_numbers<[2], [1], [1], [2], [0, 0, 0, 1, 1, 2], [0], [0]>} : vector<8x16x16xbf16>, vector<8x16x16xbf16>, vector<8x16x16xf32> -> vector<8x16x16xf32>
    "tpu.trace_stop"() : () -> ()
    %27 = arith.addf %19, %26 : vector<8x16x16xf32>
    %28 = vector.extract_strided_slice %1 {offsets = [0, 0, 0], sizes = [8, 1, 16], strides = [1, 1, 1]} : vector<8x16x16xf32> to vector<8x1x16xf32>
    %29 = vector.shape_cast %28 : vector<8x1x16xf32> to vector<8x16xf32>
    %c0_33 = arith.constant 0 : index
    %c0_34 = arith.constant 0 : index
    %30 = vector.load %arg12[%c0_33, %c0_34] : memref<8x256xf32, #tpu.memory_space<vmem>>, vector<8x16xf32>
    tpu.vector_store %arg12[%c0_33, %c0_34], %29 {strides = array<i32>} : memref<8x256xf32, #tpu.memory_space<vmem>>, vector<8x16xf32>,
    %31 = vector.extract_strided_slice %27 {offsets = [0, 0, 0], sizes = [8, 1, 16], strides = [1, 1, 1]} : vector<8x16x16xf32> to vector<8x1x16xf32>
    %32 = vector.shape_cast %31 : vector<8x1x16xf32> to vector<8x16xf32>
    %c0_35 = arith.constant 0 : index
    %c0_36 = arith.constant 0 : index
    %33 = vector.load %arg13[%c0_35, %c0_36] : memref<8x256xf32, #tpu.memory_space<vmem>>, vector<8x16xf32>
    tpu.vector_store %arg13[%c0_35, %c0_36], %32 {strides = array<i32>} : memref<8x256xf32, #tpu.memory_space<vmem>>, vector<8x16xf32>,
    %34 = vector.extract_strided_slice %1 {offsets = [0, 1, 0], sizes = [8, 1, 16], strides = [1, 1, 1]} : vector<8x16x16xf32> to vector<8x1x16xf32>
    %35 = vector.shape_cast %34 : vector<8x1x16xf32> to vector<8x16xf32>
    %c0_37 = arith.constant 0 : index
    %c16 = arith.constant 16 : index
    %36 = vector.load %arg12[%c0_37, %c16] : memref<8x256xf32, #tpu.memory_space<vmem>>, vector<8x16xf32>
    tpu.vector_store %arg12[%c0_37, %c16], %35 {strides = array<i32>} : memref<8x256xf32, #tpu.memory_space<vmem>>, vector<8x16xf32>,
    %37 = vector.extract_strided_slice %27 {offsets = [0, 1, 0], sizes = [8, 1, 16], strides = [1, 1, 1]} : vector<8x16x16xf32> to vector<8x1x16xf32>
    %38 = vector.shape_cast %37 : vector<8x1x16xf32> to vector<8x16xf32>
    %c0_38 = arith.constant 0 : index
    %c16_39 = arith.constant 16 : index
    %39 = vector.load %arg13[%c0_38, %c16_39] : memref<8x256xf32, #tpu.memory_space<vmem>>, vector<8x16xf32>
    tpu.vector_store %arg13[%c0_38, %c16_39], %38 {strides = array<i32>} : memref<8x256xf32, #tpu.memory_space<vmem>>, vector<8x16xf32>,
    %40 = vector.extract_strided_slice %1 {offsets = [0, 2, 0], sizes = [8, 1, 16], strides = [1, 1, 1]} : vector<8x16x16xf32> to vector<8x1x16xf32>
    %41 = vector.shape_cast %40 : vector<8x1x16xf32> to vector<8x16xf32>
    %c0_40 = arith.constant 0 : index
    %c32 = arith.constant 32 : index
    %42 = vector.load %arg12[%c0_40, %c32] : memref<8x256xf32, #tpu.memory_space<vmem>>, vector<8x16xf32>
    tpu.vector_store %arg12[%c0_40, %c32], %41 {strides = array<i32>} : memref<8x256xf32, #tpu.memory_space<vmem>>, vector<8x16xf32>,
    %43 = vector.extract_strided_slice %27 {offsets = [0, 2, 0], sizes = [8, 1, 16], strides = [1, 1, 1]} : vector<8x16x16xf32> to vector<8x1x16xf32>
    %44 = vector.shape_cast %43 : vector<8x1x16xf32> to vector<8x16xf32>
    %c0_41 = arith.constant 0 : index
    %c32_42 = arith.constant 32 : index
    %45 = vector.load %arg13[%c0_41, %c32_42] : memref<8x256xf32, #tpu.memory_space<vmem>>, vector<8x16xf32>
    tpu.vector_store %arg13[%c0_41, %c32_42], %44 {strides = array<i32>} : memref<8x256xf32, #tpu.memory_space<vmem>>, vector<8x16xf32>,
    %46 = vector.extract_strided_slice %1 {offsets = [0, 3, 0], sizes = [8, 1, 16], strides = [1, 1, 1]} : vector<8x16x16xf32> to vector<8x1x16xf32>
    %47 = vector.shape_cast %46 : vector<8x1x16xf32> to vector<8x16xf32>
    %c0_43 = arith.constant 0 : index
    %c48 = arith.constant 48 : index
    %48 = vector.load %arg12[%c0_43, %c48] : memref<8x256xf32, #tpu.memory_space<vmem>>, vector<8x16xf32>
    tpu.vector_store %arg12[%c0_43, %c48], %47 {strides = array<i32>} : memref<8x256xf32, #tpu.memory_space<vmem>>, vector<8x16xf32>,
    %49 = vector.extract_strided_slice %27 {offsets = [0, 3, 0], sizes = [8, 1, 16], strides = [1, 1, 1]} : vector<8x16x16xf32> to vector<8x1x16xf32>
    %50 = vector.shape_cast %49 : vector<8x1x16xf32> to vector<8x16xf32>
    %c0_44 = arith.constant 0 : index
    %c48_45 = arith.constant 48 : index
    %51 = vector.load %arg13[%c0_44, %c48_45] : memref<8x256xf32, #tpu.memory_space<vmem>>, vector<8x16xf32>
    tpu.vector_store %arg13[%c0_44, %c48_45], %50 {strides = array<i32>} : memref<8x256xf32, #tpu.memory_space<vmem>>, vector<8x16xf32>,
    %52 = vector.extract_strided_slice %1 {offsets = [0, 4, 0], sizes = [8, 1, 16], strides = [1, 1, 1]} : vector<8x16x16xf32> to vector<8x1x16xf32>
    %53 = vector.shape_cast %52 : vector<8x1x16xf32> to vector<8x16xf32>
    %c0_46 = arith.constant 0 : index
    %c64 = arith.constant 64 : index
    %54 = vector.load %arg12[%c0_46, %c64] : memref<8x256xf32, #tpu.memory_space<vmem>>, vector<8x16xf32>
    tpu.vector_store %arg12[%c0_46, %c64], %53 {strides = array<i32>} : memref<8x256xf32, #tpu.memory_space<vmem>>, vector<8x16xf32>,
    %55 = vector.extract_strided_slice %27 {offsets = [0, 4, 0], sizes = [8, 1, 16], strides = [1, 1, 1]} : vector<8x16x16xf32> to vector<8x1x16xf32>
    %56 = vector.shape_cast %55 : vector<8x1x16xf32> to vector<8x16xf32>
    %c0_47 = arith.constant 0 : index
    %c64_48 = arith.constant 64 : index
    %57 = vector.load %arg13[%c0_47, %c64_48] : memref<8x256xf32, #tpu.memory_space<vmem>>, vector<8x16xf32>
    tpu.vector_store %arg13[%c0_47, %c64_48], %56 {strides = array<i32>} : memref<8x256xf32, #tpu.memory_space<vmem>>, vector<8x16xf32>,
    %58 = vector.extract_strided_slice %1 {offsets = [0, 5, 0], sizes = [8, 1, 16], strides = [1, 1, 1]} : vector<8x16x16xf32> to vector<8x1x16xf32>
    %59 = vector.shape_cast %58 : vector<8x1x16xf32> to vector<8x16xf32>
    %c0_49 = arith.constant 0 : index
    %c80 = arith.constant 80 : index
    %60 = vector.load %arg12[%c0_49, %c80] : memref<8x256xf32, #tpu.memory_space<vmem>>, vector<8x16xf32>
    tpu.vector_store %arg12[%c0_49, %c80], %59 {strides = array<i32>} : memref<8x256xf32, #tpu.memory_space<vmem>>, vector<8x16xf32>,
    %61 = vector.extract_strided_slice %27 {offsets = [0, 5, 0], sizes = [8, 1, 16], strides = [1, 1, 1]} : vector<8x16x16xf32> to vector<8x1x16xf32>
    %62 = vector.shape_cast %61 : vector<8x1x16xf32> to vector<8x16xf32>
    %c0_50 = arith.constant 0 : index
    %c80_51 = arith.constant 80 : index
    %63 = vector.load %arg13[%c0_50, %c80_51] : memref<8x256xf32, #tpu.memory_space<vmem>>, vector<8x16xf32>
    tpu.vector_store %arg13[%c0_50, %c80_51], %62 {strides = array<i32>} : memref<8x256xf32, #tpu.memory_space<vmem>>, vector<8x16xf32>,
    %64 = vector.extract_strided_slice %1 {offsets = [0, 6, 0], sizes = [8, 1, 16], strides = [1, 1, 1]} : vector<8x16x16xf32> to vector<8x1x16xf32>
    %65 = vector.shape_cast %64 : vector<8x1x16xf32> to vector<8x16xf32>
    %c0_52 = arith.constant 0 : index
    %c96 = arith.constant 96 : index
    %66 = vector.load %arg12[%c0_52, %c96] : memref<8x256xf32, #tpu.memory_space<vmem>>, vector<8x16xf32>
    tpu.vector_store %arg12[%c0_52, %c96], %65 {strides = array<i32>} : memref<8x256xf32, #tpu.memory_space<vmem>>, vector<8x16xf32>,
    %67 = vector.extract_strided_slice %27 {offsets = [0, 6, 0], sizes = [8, 1, 16], strides = [1, 1, 1]} : vector<8x16x16xf32> to vector<8x1x16xf32>
    %68 = vector.shape_cast %67 : vector<8x1x16xf32> to vector<8x16xf32>
    %c0_53 = arith.constant 0 : index
    %c96_54 = arith.constant 96 : index
    %69 = vector.load %arg13[%c0_53, %c96_54] : memref<8x256xf32, #tpu.memory_space<vmem>>, vector<8x16xf32>
    tpu.vector_store %arg13[%c0_53, %c96_54], %68 {strides = array<i32>} : memref<8x256xf32, #tpu.memory_space<vmem>>, vector<8x16xf32>,
    %70 = vector.extract_strided_slice %1 {offsets = [0, 7, 0], sizes = [8, 1, 16], strides = [1, 1, 1]} : vector<8x16x16xf32> to vector<8x1x16xf32>
    %71 = vector.shape_cast %70 : vector<8x1x16xf32> to vector<8x16xf32>
    %c0_55 = arith.constant 0 : index
    %c112 = arith.constant 112 : index
    %72 = vector.load %arg12[%c0_55, %c112] : memref<8x256xf32, #tpu.memory_space<vmem>>, vector<8x16xf32>
    tpu.vector_store %arg12[%c0_55, %c112], %71 {strides = array<i32>} : memref<8x256xf32, #tpu.memory_space<vmem>>, vector<8x16xf32>,
    %73 = vector.extract_strided_slice %27 {offsets = [0, 7, 0], sizes = [8, 1, 16], strides = [1, 1, 1]} : vector<8x16x16xf32> to vector<8x1x16xf32>
    %74 = vector.shape_cast %73 : vector<8x1x16xf32> to vector<8x16xf32>
    %c0_56 = arith.constant 0 : index
    %c112_57 = arith.constant 112 : index
    %75 = vector.load %arg13[%c0_56, %c112_57] : memref<8x256xf32, #tpu.memory_space<vmem>>, vector<8x16xf32>
    tpu.vector_store %arg13[%c0_56, %c112_57], %74 {strides = array<i32>} : memref<8x256xf32, #tpu.memory_space<vmem>>, vector<8x16xf32>,
    %76 = vector.extract_strided_slice %1 {offsets = [0, 8, 0], sizes = [8, 1, 16], strides = [1, 1, 1]} : vector<8x16x16xf32> to vector<8x1x16xf32>
    %77 = vector.shape_cast %76 : vector<8x1x16xf32> to vector<8x16xf32>
    %c0_58 = arith.constant 0 : index
    %c128 = arith.constant 128 : index
    %78 = vector.load %arg12[%c0_58, %c128] : memref<8x256xf32, #tpu.memory_space<vmem>>, vector<8x16xf32>
    tpu.vector_store %arg12[%c0_58, %c128], %77 {strides = array<i32>} : memref<8x256xf32, #tpu.memory_space<vmem>>, vector<8x16xf32>,
    %79 = vector.extract_strided_slice %27 {offsets = [0, 8, 0], sizes = [8, 1, 16], strides = [1, 1, 1]} : vector<8x16x16xf32> to vector<8x1x16xf32>
    %80 = vector.shape_cast %79 : vector<8x1x16xf32> to vector<8x16xf32>
    %c0_59 = arith.constant 0 : index
    %c128_60 = arith.constant 128 : index
    %81 = vector.load %arg13[%c0_59, %c128_60] : memref<8x256xf32, #tpu.memory_space<vmem>>, vector<8x16xf32>
    tpu.vector_store %arg13[%c0_59, %c128_60], %80 {strides = array<i32>} : memref<8x256xf32, #tpu.memory_space<vmem>>, vector<8x16xf32>,
    %82 = vector.extract_strided_slice %1 {offsets = [0, 9, 0], sizes = [8, 1, 16], strides = [1, 1, 1]} : vector<8x16x16xf32> to vector<8x1x16xf32>
    %83 = vector.shape_cast %82 : vector<8x1x16xf32> to vector<8x16xf32>
    %c0_61 = arith.constant 0 : index
    %c144 = arith.constant 144 : index
    %84 = vector.load %arg12[%c0_61, %c144] : memref<8x256xf32, #tpu.memory_space<vmem>>, vector<8x16xf32>
    tpu.vector_store %arg12[%c0_61, %c144], %83 {strides = array<i32>} : memref<8x256xf32, #tpu.memory_space<vmem>>, vector<8x16xf32>,
    %85 = vector.extract_strided_slice %27 {offsets = [0, 9, 0], sizes = [8, 1, 16], strides = [1, 1, 1]} : vector<8x16x16xf32> to vector<8x1x16xf32>
    %86 = vector.shape_cast %85 : vector<8x1x16xf32> to vector<8x16xf32>
    %c0_62 = arith.constant 0 : index
    %c144_63 = arith.constant 144 : index
    %87 = vector.load %arg13[%c0_62, %c144_63] : memref<8x256xf32, #tpu.memory_space<vmem>>, vector<8x16xf32>
    tpu.vector_store %arg13[%c0_62, %c144_63], %86 {strides = array<i32>} : memref<8x256xf32, #tpu.memory_space<vmem>>, vector<8x16xf32>,
    %88 = vector.extract_strided_slice %1 {offsets = [0, 10, 0], sizes = [8, 1, 16], strides = [1, 1, 1]} : vector<8x16x16xf32> to vector<8x1x16xf32>
    %89 = vector.shape_cast %88 : vector<8x1x16xf32> to vector<8x16xf32>
    %c0_64 = arith.constant 0 : index
    %c160 = arith.constant 160 : index
    %90 = vector.load %arg12[%c0_64, %c160] : memref<8x256xf32, #tpu.memory_space<vmem>>, vector<8x16xf32>
    tpu.vector_store %arg12[%c0_64, %c160], %89 {strides = array<i32>} : memref<8x256xf32, #tpu.memory_space<vmem>>, vector<8x16xf32>,
    %91 = vector.extract_strided_slice %27 {offsets = [0, 10, 0], sizes = [8, 1, 16], strides = [1, 1, 1]} : vector<8x16x16xf32> to vector<8x1x16xf32>
    %92 = vector.shape_cast %91 : vector<8x1x16xf32> to vector<8x16xf32>
    %c0_65 = arith.constant 0 : index
    %c160_66 = arith.constant 160 : index
    %93 = vector.load %arg13[%c0_65, %c160_66] : memref<8x256xf32, #tpu.memory_space<vmem>>, vector<8x16xf32>
    tpu.vector_store %arg13[%c0_65, %c160_66], %92 {strides = array<i32>} : memref<8x256xf32, #tpu.memory_space<vmem>>, vector<8x16xf32>,
    %94 = vector.extract_strided_slice %1 {offsets = [0, 11, 0], sizes = [8, 1, 16], strides = [1, 1, 1]} : vector<8x16x16xf32> to vector<8x1x16xf32>
    %95 = vector.shape_cast %94 : vector<8x1x16xf32> to vector<8x16xf32>
    %c0_67 = arith.constant 0 : index
    %c176 = arith.constant 176 : index
    %96 = vector.load %arg12[%c0_67, %c176] : memref<8x256xf32, #tpu.memory_space<vmem>>, vector<8x16xf32>
    tpu.vector_store %arg12[%c0_67, %c176], %95 {strides = array<i32>} : memref<8x256xf32, #tpu.memory_space<vmem>>, vector<8x16xf32>,
    %97 = vector.extract_strided_slice %27 {offsets = [0, 11, 0], sizes = [8, 1, 16], strides = [1, 1, 1]} : vector<8x16x16xf32> to vector<8x1x16xf32>
    %98 = vector.shape_cast %97 : vector<8x1x16xf32> to vector<8x16xf32>
    %c0_68 = arith.constant 0 : index
    %c176_69 = arith.constant 176 : index
    %99 = vector.load %arg13[%c0_68, %c176_69] : memref<8x256xf32, #tpu.memory_space<vmem>>, vector<8x16xf32>
    tpu.vector_store %arg13[%c0_68, %c176_69], %98 {strides = array<i32>} : memref<8x256xf32, #tpu.memory_space<vmem>>, vector<8x16xf32>,
    %100 = vector.extract_strided_slice %1 {offsets = [0, 12, 0], sizes = [8, 1, 16], strides = [1, 1, 1]} : vector<8x16x16xf32> to vector<8x1x16xf32>
    %101 = vector.shape_cast %100 : vector<8x1x16xf32> to vector<8x16xf32>
    %c0_70 = arith.constant 0 : index
    %c192 = arith.constant 192 : index
    %102 = vector.load %arg12[%c0_70, %c192] : memref<8x256xf32, #tpu.memory_space<vmem>>, vector<8x16xf32>
    tpu.vector_store %arg12[%c0_70, %c192], %101 {strides = array<i32>} : memref<8x256xf32, #tpu.memory_space<vmem>>, vector<8x16xf32>,
    %103 = vector.extract_strided_slice %27 {offsets = [0, 12, 0], sizes = [8, 1, 16], strides = [1, 1, 1]} : vector<8x16x16xf32> to vector<8x1x16xf32>
    %104 = vector.shape_cast %103 : vector<8x1x16xf32> to vector<8x16xf32>
    %c0_71 = arith.constant 0 : index
    %c192_72 = arith.constant 192 : index
    %105 = vector.load %arg13[%c0_71, %c192_72] : memref<8x256xf32, #tpu.memory_space<vmem>>, vector<8x16xf32>
    tpu.vector_store %arg13[%c0_71, %c192_72], %104 {strides = array<i32>} : memref<8x256xf32, #tpu.memory_space<vmem>>, vector<8x16xf32>,
    %106 = vector.extract_strided_slice %1 {offsets = [0, 13, 0], sizes = [8, 1, 16], strides = [1, 1, 1]} : vector<8x16x16xf32> to vector<8x1x16xf32>
    %107 = vector.shape_cast %106 : vector<8x1x16xf32> to vector<8x16xf32>
    %c0_73 = arith.constant 0 : index
    %c208 = arith.constant 208 : index
    %108 = vector.load %arg12[%c0_73, %c208] : memref<8x256xf32, #tpu.memory_space<vmem>>, vector<8x16xf32>
    tpu.vector_store %arg12[%c0_73, %c208], %107 {strides = array<i32>} : memref<8x256xf32, #tpu.memory_space<vmem>>, vector<8x16xf32>,
    %109 = vector.extract_strided_slice %27 {offsets = [0, 13, 0], sizes = [8, 1, 16], strides = [1, 1, 1]} : vector<8x16x16xf32> to vector<8x1x16xf32>
    %110 = vector.shape_cast %109 : vector<8x1x16xf32> to vector<8x16xf32>
    %c0_74 = arith.constant 0 : index
    %c208_75 = arith.constant 208 : index
    %111 = vector.load %arg13[%c0_74, %c208_75] : memref<8x256xf32, #tpu.memory_space<vmem>>, vector<8x16xf32>
    tpu.vector_store %arg13[%c0_74, %c208_75], %110 {strides = array<i32>} : memref<8x256xf32, #tpu.memory_space<vmem>>, vector<8x16xf32>,
    %112 = vector.extract_strided_slice %1 {offsets = [0, 14, 0], sizes = [8, 1, 16], strides = [1, 1, 1]} : vector<8x16x16xf32> to vector<8x1x16xf32>
    %113 = vector.shape_cast %112 : vector<8x1x16xf32> to vector<8x16xf32>
    %c0_76 = arith.constant 0 : index
    %c224 = arith.constant 224 : index
    %114 = vector.load %arg12[%c0_76, %c224] : memref<8x256xf32, #tpu.memory_space<vmem>>, vector<8x16xf32>
    tpu.vector_store %arg12[%c0_76, %c224], %113 {strides = array<i32>} : memref<8x256xf32, #tpu.memory_space<vmem>>, vector<8x16xf32>,
    %115 = vector.extract_strided_slice %27 {offsets = [0, 14, 0], sizes = [8, 1, 16], strides = [1, 1, 1]} : vector<8x16x16xf32> to vector<8x1x16xf32>
    %116 = vector.shape_cast %115 : vector<8x1x16xf32> to vector<8x16xf32>
    %c0_77 = arith.constant 0 : index
    %c224_78 = arith.constant 224 : index
    %117 = vector.load %arg13[%c0_77, %c224_78] : memref<8x256xf32, #tpu.memory_space<vmem>>, vector<8x16xf32>
    tpu.vector_store %arg13[%c0_77, %c224_78], %116 {strides = array<i32>} : memref<8x256xf32, #tpu.memory_space<vmem>>, vector<8x16xf32>,
    %118 = vector.extract_strided_slice %1 {offsets = [0, 15, 0], sizes = [8, 1, 16], strides = [1, 1, 1]} : vector<8x16x16xf32> to vector<8x1x16xf32>
    %119 = vector.shape_cast %118 : vector<8x1x16xf32> to vector<8x16xf32>
    %c0_79 = arith.constant 0 : index
    %c240 = arith.constant 240 : index
    %120 = vector.load %arg12[%c0_79, %c240] : memref<8x256xf32, #tpu.memory_space<vmem>>, vector<8x16xf32>
    tpu.vector_store %arg12[%c0_79, %c240], %119 {strides = array<i32>} : memref<8x256xf32, #tpu.memory_space<vmem>>, vector<8x16xf32>,
    %121 = vector.extract_strided_slice %27 {offsets = [0, 15, 0], sizes = [8, 1, 16], strides = [1, 1, 1]} : vector<8x16x16xf32> to vector<8x1x16xf32>
    %122 = vector.shape_cast %121 : vector<8x1x16xf32> to vector<8x16xf32>
    %c0_80 = arith.constant 0 : index
    %c240_81 = arith.constant 240 : index
    %123 = vector.load %arg13[%c0_80, %c240_81] : memref<8x256xf32, #tpu.memory_space<vmem>>, vector<8x16xf32>
    tpu.vector_store %arg13[%c0_80, %c240_81], %122 {strides = array<i32>} : memref<8x256xf32, #tpu.memory_space<vmem>>, vector<8x16xf32>,
    %c0_82 = arith.constant 0 : index
    %c0_83 = arith.constant 0 : index
    %124 = vector.load %arg12[%c0_82, %c0_83] : memref<8x256xf32, #tpu.memory_space<vmem>>, vector<8x256xf32>
    %c0_84 = arith.constant 0 : index
    %c0_85 = arith.constant 0 : index
    %125 = vector.load %arg13[%c0_84, %c0_85] : memref<8x256xf32, #tpu.memory_space<vmem>>, vector<8x256xf32>
    %c0_86 = arith.constant 0 : index
    %c0_87 = arith.constant 0 : index
    %126 = vector.load %arg5[%c0_86, %c0_87] : memref<8x8xbf16, #tpu.memory_space<vmem>>, vector<8x8xbf16>
    %127 = arith.truncf %125 : vector<8x256xf32> to vector<8x256xbf16>
    %cst_88 = arith.constant dense<0.000000e+00> : vector<8x256xf32>
    %128 = tpu.matmul %126, %127, %cst_88 {dimension_numbers = #tpu.dot_dimension_numbers<[1], [0], [0], [1], [0, 0, 1, 1], [], []>} : vector<8x8xbf16>, vector<8x256xbf16>, vector<8x256xf32> -> vector<8x256xf32>
    %c0_89 = arith.constant 0 : index
    %c0_90 = arith.constant 0 : index
    %129 = vector.load %arg6[%c0_89, %c0_90] : memref<8x1xf32, #tpu.memory_space<vmem>>, vector<8x1xf32>
    %130 = vector.broadcast %129 : vector<8x1xf32> to vector<8x256xf32>
    %131 = arith.addf %128, %130 : vector<8x256xf32>
    %c0_91 = arith.constant 0 : index
    %c0_92 = arith.constant 0 : index
    %132 = vector.load %arg7[%c0_91, %c0_92] : memref<8x8xbf16, #tpu.memory_space<vmem>>, vector<8x8xbf16>
    %133 = arith.truncf %124 : vector<8x256xf32> to vector<8x256xbf16>
    %cst_93 = arith.constant dense<0.000000e+00> : vector<8x256xf32>
    %134 = tpu.matmul %132, %133, %cst_93 {dimension_numbers = #tpu.dot_dimension_numbers<[1], [0], [0], [1], [0, 0, 1, 1], [], []>} : vector<8x8xbf16>, vector<8x256xbf16>, vector<8x256xf32> -> vector<8x256xf32>
    %c0_94 = arith.constant 0 : index
    %c0_95 = arith.constant 0 : index
    %135 = vector.load %arg8[%c0_94, %c0_95] : memref<8x1xf32, #tpu.memory_space<vmem>>, vector<8x1xf32>
    %136 = vector.broadcast %135 : vector<8x1xf32> to vector<8x256xf32>
    %137 = arith.addf %134, %136 : vector<8x256xf32>
    %cst_96 = arith.constant 5.000000e-01 : f32
    %138 = vector.broadcast %cst_96 : f32 to vector<8x256xf32>
    %139 = arith.mulf %138, %137 : vector<8x256xf32>
    %140 = arith.mulf %137, %137 : vector<8x256xf32>
    %141 = arith.mulf %140, %137 : vector<8x256xf32>
    %cst_97 = arith.constant 4.471500e-02 : f32
    %142 = vector.broadcast %cst_97 : f32 to vector<8x256xf32>
    %143 = arith.mulf %142, %141 : vector<8x256xf32>
    %144 = arith.addf %137, %143 : vector<8x256xf32>
    %cst_98 = arith.constant 0.797884583 : f32
    %145 = vector.broadcast %cst_98 : f32 to vector<8x256xf32>
    %146 = arith.mulf %145, %144 : vector<8x256xf32>
    %147 = math.tanh %146 : vector<8x256xf32>
    %cst_99 = arith.constant 1.000000e+00 : f32
    %148 = vector.broadcast %cst_99 : f32 to vector<8x256xf32>
    %149 = arith.addf %148, %147 : vector<8x256xf32>
    %150 = arith.mulf %139, %149 : vector<8x256xf32>
    %151 = arith.mulf %150, %131 : vector<8x256xf32>
    %c0_100 = arith.constant 0 : index
    %c0_101 = arith.constant 0 : index
    %152 = vector.load %arg9[%c0_100, %c0_101] : memref<8x8xbf16, #tpu.memory_space<vmem>>, vector<8x8xbf16>
    %153 = arith.truncf %151 : vector<8x256xf32> to vector<8x256xbf16>
    %cst_102 = arith.constant dense<0.000000e+00> : vector<8x256xf32>
    %154 = tpu.matmul %152, %153, %cst_102 {dimension_numbers = #tpu.dot_dimension_numbers<[1], [0], [0], [1], [0, 0, 1, 1], [], []>} : vector<8x8xbf16>, vector<8x256xbf16>, vector<8x256xf32> -> vector<8x256xf32>
    %c0_103 = arith.constant 0 : index
    %c0_104 = arith.constant 0 : index
    %155 = vector.load %arg10[%c0_103, %c0_104] : memref<8x1xf32, #tpu.memory_space<vmem>>, vector<8x1xf32>
    %156 = vector.broadcast %155 : vector<8x1xf32> to vector<8x256xf32>
    %157 = arith.addf %154, %156 : vector<8x256xf32>
    %158 = arith.addf %157, %124 : vector<8x256xf32>
    %c0_105 = arith.constant 0 : index
    %c0_106 = arith.constant 0 : index
    %c0_107 = arith.constant 0 : index
    %159 = vector.load %arg11[%c0_105, %c0_106, %c0_107] : memref<1x8x256xf32, #tpu.memory_space<vmem>>, vector<1x8x256xf32>
    %160 = vector.shape_cast %159 : vector<1x8x256xf32> to vector<8x256xf32>
    %161 = vector.shape_cast %158 : vector<8x256xf32> to vector<1x8x256xf32>
    tpu.vector_store %arg11[%c0_105, %c0_106, %c0_107], %161 {strides = array<i32>} : memref<1x8x256xf32, #tpu.memory_space<vmem>>, vector<1x8x256xf32>,
    return
  }
  func.func @transform_0(%arg0: i32) -> (i32, i32, i32, i32) {
    %c0_i32 = arith.constant 0 : i32
    %c0_i32_0 = arith.constant 0 : i32
    %c0_i32_1 = arith.constant 0 : i32
    %c0_i32_2 = arith.constant 0 : i32
    return %arg0, %c0_i32, %c0_i32_0, %c0_i32_1 : i32, i32, i32, i32
  }
  func.func @transform_1(%arg0: i32) -> (i32, i32, i32, i32) {
    %c0_i32 = arith.constant 0 : i32
    %c0_i32_0 = arith.constant 0 : i32
    %c0_i32_1 = arith.constant 0 : i32
    %c0_i32_2 = arith.constant 0 : i32
    %c0_i32_3 = arith.constant 0 : i32
    return %c0_i32, %c0_i32_0, %c0_i32_1, %c0_i32_2 : i32, i32, i32, i32
  }
  func.func @transform_2(%arg0: i32) -> (i32, i32, i32, i32) {
    %c0_i32 = arith.constant 0 : i32
    %c0_i32_0 = arith.constant 0 : i32
    %c0_i32_1 = arith.constant 0 : i32
    %c0_i32_2 = arith.constant 0 : i32
    %c0_i32_3 = arith.constant 0 : i32
    return %c0_i32, %c0_i32_0, %c0_i32_1, %c0_i32_2 : i32, i32, i32, i32
  }
  func.func @transform_3(%arg0: i32) -> (i32, i32, i32) {
    %c0_i32 = arith.constant 0 : i32
    %c0_i32_0 = arith.constant 0 : i32
    %c0_i32_1 = arith.constant 0 : i32
    %c0_i32_2 = arith.constant 0 : i32
    return %c0_i32, %c0_i32_0, %c0_i32_1 : i32, i32, i32
  }
  func.func @transform_4(%arg0: i32) -> (i32, i32) {
    %c0_i32 = arith.constant 0 : i32
    %c0_i32_0 = arith.constant 0 : i32
    %c0_i32_1 = arith.constant 0 : i32
    return %c0_i32, %c0_i32_0 : i32, i32
  }
  func.func @transform_5(%arg0: i32) -> (i32, i32) {
    %c0_i32 = arith.constant 0 : i32
    %c0_i32_0 = arith.constant 0 : i32
    %c0_i32_1 = arith.constant 0 : i32
    return %c0_i32, %c0_i32_0 : i32, i32
  }
  func.func @transform_6(%arg0: i32) -> (i32, i32) {
    %c0_i32 = arith.constant 0 : i32
    %c0_i32_0 = arith.constant 0 : i32
    %c0_i32_1 = arith.constant 0 : i32
    return %c0_i32, %c0_i32_0 : i32, i32
  }
  func.func @transform_7(%arg0: i32) -> (i32, i32) {
    %c0_i32 = arith.constant 0 : i32
    %c0_i32_0 = arith.constant 0 : i32
    %c0_i32_1 = arith.constant 0 : i32
    return %c0_i32, %c0_i32_0 : i32, i32
  }
  func.func @transform_8(%arg0: i32) -> (i32, i32) {
    %c0_i32 = arith.constant 0 : i32
    %c0_i32_0 = arith.constant 0 : i32
    %c0_i32_1 = arith.constant 0 : i32
    return %c0_i32, %c0_i32_0 : i32, i32
  }
  func.func @transform_9(%arg0: i32) -> (i32, i32) {
    %c0_i32 = arith.constant 0 : i32
    %c0_i32_0 = arith.constant 0 : i32
    %c0_i32_1 = arith.constant 0 : i32
    return %c0_i32, %c0_i32_0 : i32, i32
  }
  func.func @transform_10(%arg0: i32) -> (i32, i32, i32) {
    %c0_i32 = arith.constant 0 : i32
    %c0_i32_0 = arith.constant 0 : i32
    %c0_i32_1 = arith.constant 0 : i32
    return %arg0, %c0_i32, %c0_i32_0 : i32, i32, i32
  }
}

</mosaic_0001>

<bundles_post_ra>
// kernel: attention_pallas.1
= control target key start
LH: loop header
LB: loop body
LE: loop exit
PB: predicated region body
PF: predicated region fallthrough
CT: control target
= control target key end

     0   :  { %s4630_s13 = smov 0   ;;  %s5818_s0 = inlined_call_operand.vmem [shape: f32[2,8,16,16], index: 0, kind: input, shape index: {}]   ;;  %s5819_s1 = inlined_call_operand.vmem [shape: bf16[3,8,16,16], index: 1, kind: input, shape index: {}]   ;;  %s5820_s2 = inlined_call_operand.vmem [shape: bf16[3,8,16,16], index: 2, kind: input, shape index: {}]   ;;  %s5821_s3 = inlined_call_operand.vmem [shape: f32[8,16,16], index: 3, kind: input, shape index: {}]   ;;  %s5822_s4 = inlined_call_operand.vmem [shape: bf16[8,8], index: 4, kind: input, shape index: {}]   ;;  %s5823_s5 = inlined_call_operand.vmem [shape: f32[8,1], index: 5, kind: input, shape index: {}]   ;;  %s5824_s6 = inlined_call_operand.vmem [shape: bf16[8,8], index: 6, kind: input, shape index: {}]   ;;  %s5825_s7 = inlined_call_operand.vmem [shape: f32[8,1], index: 7, kind: input, shape index: {}]   ;;  %s5826_s8 = inlined_call_operand.vmem [shape: bf16[8,8], index: 8, kind: input, shape index: {}]   ;;  %s5827_s9 = inlined_call_operand.vmem [shape: f32[8,1], index: 9, kind: input, shape index: {}]   ;;  %s5828_s10 = inlined_call_operand.vmem [shape: f32[2,8,256], index: 10, kind: output, shape index: {}]  }
   0x1 LB: > { %s3826_s14 = sadd.s32 4294967295, %s4563_s13   ;;  %p3830_p0 = scmp.ge.s32.totalorder %s4563_s13, 1  ;;  %s4563_s13 = sphi %s4630_s13, %s20_s13  }
   0x2   : > { %p312_p1 = scmp.lt.s32.totalorder %s4563_s13, 3 }
   0x4   : > { %p313_p2 = pnand %p3830_p0, %p312_p1 }
   0x5   : > { %p350_p3 = scmp.lt.s32.totalorder (!%p313_p2), %s3826_s14, 1  ;;  %v4565_v0 = vmov (!%p313_p2), 0.0   ;;  %vm4566_vm0 = vmmov (!%p313_p2), 0   ;;  %v4489_v9 = vld [vmem:[%s5819_s1] sm:$0xff] (!%p313_p2)   ;;  %vm422_vm1 = vcmask (!%p313_p2), 130048   ;;  %v4490_v12 = vld [vmem:[%s5819_s1 + $0x8] sm:$0xff] (!%p313_p2)  }
   0x6   : > { %316 = sbr.rel (%p313_p2) target bundleno = 1574 (0x626), region = 60  ;;  %4101 = vmatprep.subr.bf16.mxu0 (!%p313_p2), %v4565_v0  ;;  %4107 = vmatprep.subr.bf16.mxu1 (!%p313_p2), %v4565_v0  ;;  %v4491_v19 = vld [vmem:[%s5819_s1 + $0x10] sm:$0xff] (!%p313_p2)   ;;  %v4492_v20 = vld [vmem:[%s5819_s1 + $0x18] sm:$0xff] (!%p313_p2)   ;;  %v4493_v27 = vld [vmem:[%s5819_s1 + $0x20] sm:$0xff] (!%p313_p2)   ;;  %vm2959_vm2 = vcmask (!%p313_p2), 1041409   ;;  %vm2962_vm3 = vcmask (!%p313_p2), 1042434  }
   0x7   : > { %4103 = vmatprep.mubr.msk.bf16.mxu0 (!%p313_p2), %vm4566_vm0, %v4565_v0  ;;  %4109 = vmatprep.mubr.msk.bf16.mxu1 (!%p313_p2), %vm4566_vm0, %v4565_v0  ;;  %v4494_v28 = vld [vmem:[%s5819_s1 + $0x28] sm:$0xff] (!%p313_p2)   ;;  %v4495_v31 = vld [vmem:[%s5819_s1 + $0x30] sm:$0xff] (!%p313_p2)   ;;  %v4496_v32 = vld [vmem:[%s5819_s1 + $0x38] sm:$0xff] (!%p313_p2)   ;;  %vm2965_vm4 = vcmask (!%p313_p2), 1043459   ;;  %vm2968_vm5 = vcmask (!%p313_p2), 1044484   ;;  %vm2971_vm6 = vcmask (!%p313_p2), 1045509  }
   0x8   : > { %v4497_v33 = vld [vmem:[%s5820_s2] sm:$0xff] (!%p313_p2)   ;;  %v4498_v34 = vld [vmem:[%s5820_s2 + $0x8] sm:$0xff] (!%p313_p2)   ;;  %v4499_v40 = vld [vmem:[%s5820_s2 + $0x10] sm:$0xff] (!%p313_p2)   ;;  %vm2974_vm7 = vcmask (!%p313_p2), 1046534   ;;  %vm2977_vm8 = vcmask (!%p313_p2), 1047559   ;;  %s4567_s17 = smov (!%p313_p2), 32  }
   0x9   : > { %v4500_v44 = vld [vmem:[%s5820_s2 + $0x18] sm:$0xff] (!%p313_p2)   ;;  %v4501_v52 = vld [vmem:[%s5820_s2 + $0x20] sm:$0xff] (!%p313_p2)   ;;  %v4502_v56 = vld [vmem:[%s5820_s2 + $0x28] sm:$0xff] (!%p313_p2)   ;;  %s4568_s19 = smov (!%p313_p2), 16   ;;  %s4569_s20 = smov (!%p313_p2), 48   ;;  %vm3022_vm9 = vcmask (!%p313_p2), 261248  }
   0xa   : > { %s4570_s21 = smov (!%p313_p2), 64   ;;  %s4572_s16 = smov (!%p313_p2), 96   ;;  %vm3059_vm10 = vcmask (!%p313_p2), 392448   ;;  %vm3096_vm11 = vcmask (!%p313_p2), 523648   ;;  %vm3133_vm12 = vcmask (!%p313_p2), 654848   ;;  %vm3170_vm13 = vcmask (!%p313_p2), 786048  }
   0xb   : > { %s4573_s22 = smov (!%p313_p2), 112   ;;  %vm3207_vm14 = vcmask (!%p313_p2), 917248   ;;  %vm5829_vm15 = vcmask (!%p313_p2), 1048448  }
   0xd   : > { %s5833_s14 = smov (!%p350_p3, %s3826_s14), 1 }
   0xe   : > { %s4003_s15 = sshll.u32 %s5833_s14, 7  ;;  %s4004_s27 = sshll.u32 %s5833_s14, 4 }
   0xf   : > { %s4650_s18 = scalar_lea.vmem %s5818_s0, %s4003_s15  ;;  %s359_s30 = scalar_lea.vmem %s5828_s10, %s4004_s27 }
  0x10   : > { %v4653_v1 = vld [vmem:[%s4650_s18] sm:$0xff]  ;;  %v4656_v2 = vld [vmem:[%s4650_s18 + $0x8] sm:$0xff]  ;;  %v4659_v3 = vld [vmem:[%s4650_s18 + $0x10] sm:$0xff] }
  0x11   : > { %v4663_v4 = vpack.c.bf16 %v4656_v2, %v4653_v1  ;;  %v4666_v5 = vld [vmem:[%s4650_s18 + $0x18] sm:$0xff]  ;;  %v4669_v6 = vld [vmem:[%s4650_s18 + $0x20] sm:$0xff]  ;;  %v4672_v7 = vld [vmem:[%s4650_s18 + $0x28] sm:$0xff] }
  0x12   : > { %v4676_v8 = vpack.c.bf16 %v4666_v5, %v4659_v3  ;;  %v4682_v10 = vld [vmem:[%s4650_s18 + $0x30] sm:$0xff]  ;;  %v4685_v11 = vld [vmem:[%s4650_s18 + $0x38] sm:$0xff]  ;;  %v4693_v13 = vpack.c.bf16 %v4672_v7, %v4669_v6  ;;  %v4704_v15 = vld [vmem:[%s4650_s18 + $0x40] sm:$0xff] }
  0x13   : > { %4102 = vmatpush3.bf16.msra.mxu0 %v4663_v4  ;;  %v4699_v14 = vpack.c.bf16 %v4685_v11, %v4682_v10  ;;  %v4707_v16 = vld [vmem:[%s4650_s18 + $0x48] sm:$0xff]  ;;  %v4712_v17 = vld [vmem:[%s4650_s18 + $0x50] sm:$0xff]  ;;  %v4715_v18 = vld [vmem:[%s4650_s18 + $0x58] sm:$0xff] }
  0x14   : > { %4108 = vmatpush3.bf16.msra.mxu1 %v4676_v8  ;;  %4113 = vmatprep.subr.bf16.mxu0 %v4565_v0  ;;  %v4732_v21 = vpack.c.bf16 %v4707_v16, %v4704_v15  ;;  %v4736_v22 = vpack.c.bf16 %v4715_v18, %v4712_v17  ;;  %v4740_v23 = vld [vmem:[%s4650_s18 + $0x60] sm:$0xff]  ;;  %v4743_v24 = vld [vmem:[%s4650_s18 + $0x68] sm:$0xff]  ;;  %v4748_v25 = vld [vmem:[%s4650_s18 + $0x70] sm:$0xff] }
  0x15   : > { %4119 = vmatprep.subr.bf16.mxu1 %v4565_v0  ;;  %v4751_v26 = vld [vmem:[%s4650_s18 + $0x78] sm:$0xff]  ;;  %v4768_v29 = vpack.c.bf16 %v4743_v24, %v4740_v23 }
  0x16   : > { %4104 = vmatmul.mubr.msk.bf16.vlgmr.msra.gmra.mrb[0].mxu0 %vm422_vm1, %v4489_v9  ;;  %v4772_v30 = vpack.c.bf16 %v4751_v26, %v4748_v25  ;;  %v4503_v9 = vld [vmem:[%s5820_s2 + $0x30] sm:$0xff]  }
  0x17   : > { %4110 = vmatmul.mubr.msk.bf16.vlgmr.msra.gmra.mrb[0].mxu1 %vm422_vm1, %v4490_v12  ;;  %4114 = vmatpush3.bf16.msra.mxu0 %v4693_v13 }
  0x18   : > { %4120 = vmatpush3.bf16.msra.mxu1 %v4699_v14  ;;  %4115 = vmatprep.mubr.msk.bf16.mxu0 %vm4566_vm0, %v4565_v0 }
  0x19   : > { %4121 = vmatprep.mubr.msk.bf16.mxu1 %vm4566_vm0, %v4565_v0  ;;  %4125 = vmatprep.subr.bf16.mxu0 %v4565_v0 }
  0x1a   : > { %4131 = vmatprep.subr.bf16.mxu1 %v4565_v0 }
  0x1e   : > { %4116 = vmatmul.mubr.msk.bf16.vlgmr.msra.gmra.mrb[4].mxu0 %vm422_vm1, %v4491_v19 }
  0x1f   : > { %4122 = vmatmul.mubr.msk.bf16.vlgmr.msra.gmra.mrb[4].mxu1 %vm422_vm1, %v4492_v20  ;;  %4126 = vmatpush3.bf16.msra.mxu0 %v4732_v21 }
  0x20   : > { %4132 = vmatpush3.bf16.msra.mxu1 %v4736_v22  ;;  %4127 = vmatprep.mubr.msk.bf16.mxu0 %vm4566_vm0, %v4565_v0 }
  0x21   : > { %4133 = vmatprep.mubr.msk.bf16.mxu1 %vm4566_vm0, %v4565_v0  ;;  %4137 = vmatprep.subr.bf16.mxu0 %v4565_v0 }
  0x22   : > { %4143 = vmatprep.subr.bf16.mxu1 %v4565_v0 }
  0x26   : > { %4128 = vmatmul.mubr.msk.bf16.vlgmr.msra.gmra.mrb[8].mxu0 %vm422_vm1, %v4493_v27  ;;  %v4504_v27 = vld [vmem:[%s5820_s2 + $0x38] sm:$0xff]  }
  0x27   : > { %4134 = vmatmul.mubr.msk.bf16.vlgmr.msra.gmra.mrb[8].mxu1 %vm422_vm1, %v4494_v28  ;;  %4138 = vmatpush3.bf16.msra.mxu0 %v4768_v29 }
  0x28   : > { %4144 = vmatpush3.bf16.msra.mxu1 %v4772_v30  ;;  %4139 = vmatprep.mubr.msk.bf16.mxu0 %vm4566_vm0, %v4565_v0 }
  0x29   : > { %4145 = vmatprep.mubr.msk.bf16.mxu1 %vm4566_vm0, %v4565_v0  ;;  %4149 = vmatprep.subr.bf16.mxu0 %v4565_v0 }
  0x2a   : > { %4155 = vmatprep.subr.bf16.mxu1 %v4565_v0 }
  0x2e   : > { %4140 = vmatmul.mubr.msk.bf16.vlgmr.msra.gmra.mrb[12].mxu0 %vm422_vm1, %v4495_v31 }
  0x2f   : > { %4146 = vmatmul.mubr.msk.bf16.vlgmr.msra.gmra.mrb[12].mxu1 %vm422_vm1, %v4496_v32  ;;  %4151 = vmatprep.mubr.msk.bf16.mxu0 %vm4566_vm0, %v4565_v0 }
  0x30   : > { %4157 = vmatprep.mubr.msk.bf16.mxu1 %vm4566_vm0, %v4565_v0  ;;  %4150 = vmatpush3.bf16.msra.mxu0 %v4497_v33 }
  0x31   : > { %4156 = vmatpush3.bf16.msra.mxu1 %v4498_v34  ;;  %4161 = vmatprep.subr.bf16.mxu0 %v4565_v0 }
  0x32   : > { %4167 = vmatprep.subr.bf16.mxu1 %v4565_v0 }
  0xe9   : > { %v460_v35 = vpop.f32.mrb[0].mxu0 }
  0xea   : > { %v509_v36 = vpop.f32.mrb[0].mxu1  ;;  %v4105_v37 = vpop.f32.mrb[1].mxu0 }
  0xeb   : > { %v4111_v38 = vpop.f32.mrb[1].mxu1  ;;  %v463_v39 = vpop.f32.mrb[2].mxu0 }
  0xec   : > { %v810_v41 = vpack.c.bf16 %v463_v39, %v460_v35  ;;  %v512_v42 = vpop.f32.mrb[2].mxu1  ;;  %v4106_v43 = vpop.f32.mrb[3].mxu0 }
  0xed   : > { %v811_v45 = vpack.c.bf16 %v512_v42, %v509_v36  ;;  %v4112_v46 = vpop.f32.mrb[3].mxu1  ;;  %v4505_v42 = vld [vmem:[%s5819_s1 + $0x40] sm:$0xff]   ;;  %v4506_v43 = vld [vmem:[%s5819_s1 + $0x48] sm:$0xff]  }
  0xee   : > { %4152 = vmatmul.mubr.msk.bf16.vlgmr.msra.gmra.mrb[16].mxu0 %vm422_vm1, %v810_v41  ;;  %v4509_v46 = vld [vmem:[%s5819_s1 + $0x60] sm:$0xff]  }
  0xef   : > { %4158 = vmatmul.mubr.msk.bf16.vlgmr.msra.gmra.mrb[16].mxu1 %vm422_vm1, %v811_v45  ;;  %4162 = vmatpush3.bf16.msra.mxu0 %v4499_v40  ;;  %v4508_v45 = vld [vmem:[%s5819_s1 + $0x58] sm:$0xff]  }
  0xf0   : > { %4168 = vmatpush3.bf16.msra.mxu1 %v4500_v44  ;;  %4163 = vmatprep.mubr.msk.bf16.mxu0 %vm4566_vm0, %v4565_v0  ;;  %v4507_v44 = vld [vmem:[%s5819_s1 + $0x50] sm:$0xff]  }
  0xf1   : > { %v558_v47 = vpop.f32.mrb[4].mxu0  ;;  %4169 = vmatprep.mubr.msk.bf16.mxu1 %vm4566_vm0, %v4565_v0  ;;  %4173 = vmatprep.subr.bf16.mxu0 %v4565_v0 }
  0xf2   : > { %v607_v48 = vpop.f32.mrb[4].mxu1  ;;  %v4117_v49 = vpop.f32.mrb[5].mxu0  ;;  %4179 = vmatprep.subr.bf16.mxu1 %v4565_v0 }
  0xf3   : > { %v4123_v50 = vpop.f32.mrb[5].mxu1  ;;  %v561_v51 = vpop.f32.mrb[6].mxu0  ;;  %v4512_v49 = vld [vmem:[%s5819_s1 + $0x78] sm:$0xff]  }
  0xf4   : > { %v812_v53 = vpack.c.bf16 %v561_v51, %v558_v47  ;;  %v610_v54 = vpop.f32.mrb[6].mxu1  ;;  %v4118_v55 = vpop.f32.mrb[7].mxu0  ;;  %v4510_v47 = vld [vmem:[%s5819_s1 + $0x68] sm:$0xff]   ;;  %v4513_v50 = vld [vmem:[%s5820_s2 + $0x40] sm:$0xff]  }
  0xf5   : > { %v813_v57 = vpack.c.bf16 %v610_v54, %v607_v48  ;;  %v4124_v58 = vpop.f32.mrb[7].mxu1  ;;  %v4511_v48 = vld [vmem:[%s5819_s1 + $0x70] sm:$0xff]   ;;  %v4514_v51 = vld [vmem:[%s5820_s2 + $0x48] sm:$0xff]  }
  0xf6   : > { %4164 = vmatmul.mubr.msk.bf16.vlgmr.msra.gmra.mrb[20].mxu0 %vm422_vm1, %v812_v53 }
  0xf7   : > { %4170 = vmatmul.mubr.msk.bf16.vlgmr.msra.gmra.mrb[20].mxu1 %vm422_vm1, %v813_v57  ;;  %4174 = vmatpush3.bf16.msra.mxu0 %v4501_v52  ;;  %v4515_v57 = vld [vmem:[%s5820_s2 + $0x50] sm:$0xff]  }
  0xf8   : > { %4180 = vmatpush3.bf16.msra.mxu1 %v4502_v56  ;;  %4175 = vmatprep.mubr.msk.bf16.mxu0 %vm4566_vm0, %v4565_v0 }
  0xf9   : > { %v656_v59 = vpop.f32.mrb[8].mxu0  ;;  %4181 = vmatprep.mubr.msk.bf16.mxu1 %vm4566_vm0, %v4565_v0  ;;  %4185 = vmatprep.subr.bf16.mxu0 %v4565_v0 }
  0xfa   : > { %v705_v60 = vpop.f32.mrb[8].mxu1  ;;  %v4129_v61 = vpop.f32.mrb[9].mxu0  ;;  %4191 = vmatprep.subr.bf16.mxu1 %v4565_v0 }
  0xfb   : > { %v4135_v62 = vpop.f32.mrb[9].mxu1  ;;  %v659_v63 = vpop.f32.mrb[10].mxu0  ;;  %v4516_v61 = vld [vmem:[%s5820_s2 + $0x58] sm:$0xff]  }
  0xfc   : > { %v814_v12 = vpack.c.bf16 %v659_v63, %v656_v59  ;;  %v708_v19 = vpop.f32.mrb[10].mxu1  ;;  %v4130_v20 = vpop.f32.mrb[11].mxu0 }
  0xfd   : > { %v815_v28 = vpack.c.bf16 %v708_v19, %v705_v60  ;;  %v4136_v31 = vpop.f32.mrb[11].mxu1 }
  0xfe   : > { %4176 = vmatmul.mubr.msk.bf16.vlgmr.msra.gmra.mrb[24].mxu0 %vm422_vm1, %v814_v12 }
  0xff   : > { %4182 = vmatmul.mubr.msk.bf16.vlgmr.msra.gmra.mrb[24].mxu1 %vm422_vm1, %v815_v28  ;;  %4186 = vmatpush3.bf16.msra.mxu0 %v4503_v9  ;;  %v4517_v28 = vld [vmem:[%s5820_s2 + $0x60] sm:$0xff]  }
 0x100   : > { %4192 = vmatpush3.bf16.msra.mxu1 %v4504_v27  ;;  %4187 = vmatprep.mubr.msk.bf16.mxu0 %vm4566_vm0, %v4565_v0 }
 0x101   : > { %v754_v32 = vpop.f32.mrb[12].mxu0  ;;  %4193 = vmatprep.mubr.msk.bf16.mxu1 %vm4566_vm0, %v4565_v0  ;;  %4197 = vmatprep.subr.bf16.mxu0 %v4565_v0 }
 0x102   : > { %v803_v33 = vpop.f32.mrb[12].mxu1  ;;  %v4141_v34 = vpop.f32.mrb[13].mxu0  ;;  %4203 = vmatprep.subr.bf16.mxu1 %v4565_v0 }
 0x103   : > { %v4147_v35 = vpop.f32.mrb[13].mxu1  ;;  %v757_v36 = vpop.f32.mrb[14].mxu0  ;;  %v4518_v34 = vld [vmem:[%s5820_s2 + $0x68] sm:$0xff]  }
 0x104   : > { %v816_v37 = vpack.c.bf16 %v757_v36, %v754_v32  ;;  %v806_v38 = vpop.f32.mrb[14].mxu1  ;;  %v4142_v39 = vpop.f32.mrb[15].mxu0 }
 0x105   : > { %v817_v40 = vpack.c.bf16 %v806_v38, %v803_v33  ;;  %v4148_v41 = vpop.f32.mrb[15].mxu1 }
 0x106   : > { %4188 = vmatmul.mubr.msk.bf16.vlgmr.msra.gmra.mrb[28].mxu0 %vm422_vm1, %v816_v37 }
 0x107   : > { %4194 = vmatmul.mubr.msk.bf16.vlgmr.msra.gmra.mrb[28].mxu1 %vm422_vm1, %v817_v40  ;;  %4198 = vmatpush3.bf16.msra.mxu0 %v4663_v4 }
 0x108   : > { %4204 = vmatpush3.bf16.msra.mxu1 %v4676_v8  ;;  %4199 = vmatprep.mubr.msk.bf16.mxu0 %vm4566_vm0, %v4565_v0 }
 0x109   : > { %4205 = vmatprep.mubr.msk.bf16.mxu1 %vm4566_vm0, %v4565_v0  ;;  %4209 = vmatprep.subr.bf16.mxu0 %v4565_v0 }
 0x10a   : > { %4215 = vmatprep.subr.bf16.mxu1 %v4565_v0 }
 0x10e   : > { %4200 = vmatmul.mubr.msk.bf16.vlgmr.msra.gmra.mrb[32].mxu0 %vm422_vm1, %v4505_v42  ;;  %v4519_v42 = vld [vmem:[%s5820_s2 + $0x70] sm:$0xff]  }
 0x10f   : > { %4206 = vmatmul.mubr.msk.bf16.vlgmr.msra.gmra.mrb[32].mxu1 %vm422_vm1, %v4506_v43  ;;  %4210 = vmatpush3.bf16.msra.mxu0 %v4693_v13 }
 0x110   : > { %4216 = vmatpush3.bf16.msra.mxu1 %v4699_v14  ;;  %4211 = vmatprep.mubr.msk.bf16.mxu0 %vm4566_vm0, %v4565_v0 }
 0x111   : > { %4217 = vmatprep.mubr.msk.bf16.mxu1 %vm4566_vm0, %v4565_v0  ;;  %4221 = vmatprep.subr.bf16.mxu0 %v4565_v0 }
 0x112   : > { %4227 = vmatprep.subr.bf16.mxu1 %v4565_v0 }
 0x116   : > { %4212 = vmatmul.mubr.msk.bf16.vlgmr.msra.gmra.mrb[36].mxu0 %vm422_vm1, %v4507_v44 }
 0x117   : > { %4218 = vmatmul.mubr.msk.bf16.vlgmr.msra.gmra.mrb[36].mxu1 %vm422_vm1, %v4508_v45  ;;  %4222 = vmatpush3.bf16.msra.mxu0 %v4732_v21 }
 0x118   : > { %4228 = vmatpush3.bf16.msra.mxu1 %v4736_v22  ;;  %4223 = vmatprep.mubr.msk.bf16.mxu0 %vm4566_vm0, %v4565_v0 }
 0x119   : > { %4229 = vmatprep.mubr.msk.bf16.mxu1 %vm4566_vm0, %v4565_v0  ;;  %4233 = vmatprep.subr.bf16.mxu0 %v4565_v0 }
 0x11a   : > { %4239 = vmatprep.subr.bf16.mxu1 %v4565_v0 }
 0x11e   : > { %4224 = vmatmul.mubr.msk.bf16.vlgmr.msra.gmra.mrb[40].mxu0 %vm422_vm1, %v4509_v46  ;;  %v4520_v46 = vld [vmem:[%s5820_s2 + $0x78] sm:$0xff]  }
 0x11f   : > { %4230 = vmatmul.mubr.msk.bf16.vlgmr.msra.gmra.mrb[40].mxu1 %vm422_vm1, %v4510_v47  ;;  %4234 = vmatpush3.bf16.msra.mxu0 %v4768_v29 }
 0x120   : > { %4240 = vmatpush3.bf16.msra.mxu1 %v4772_v30  ;;  %4235 = vmatprep.mubr.msk.bf16.mxu0 %vm4566_vm0, %v4565_v0 }
 0x121   : > { %4241 = vmatprep.mubr.msk.bf16.mxu1 %vm4566_vm0, %v4565_v0  ;;  %4245 = vmatprep.subr.bf16.mxu0 %v4565_v0 }
 0x122   : > { %4251 = vmatprep.subr.bf16.mxu1 %v4565_v0 }
 0x126   : > { %4236 = vmatmul.mubr.msk.bf16.vlgmr.msra.gmra.mrb[44].mxu0 %vm422_vm1, %v4511_v48 }
 0x127   : > { %4242 = vmatmul.mubr.msk.bf16.vlgmr.msra.gmra.mrb[44].mxu1 %vm422_vm1, %v4512_v49  ;;  %4247 = vmatprep.mubr.msk.bf16.mxu0 %vm4566_vm0, %v4565_v0 }
 0x128   : > { %4253 = vmatprep.mubr.msk.bf16.mxu1 %vm4566_vm0, %v4565_v0  ;;  %4246 = vmatpush3.bf16.msra.mxu0 %v4513_v50 }
 0x129   : > { %4252 = vmatpush3.bf16.msra.mxu1 %v4514_v51  ;;  %4257 = vmatprep.subr.bf16.mxu0 %v4565_v0 }
 0x12a   : > { %4263 = vmatprep.subr.bf16.mxu1 %v4565_v0 }
 0x1e1   : > { %v1309_v52 = vpop.f32.mrb[32].mxu0 }
 0x1e2   : > { %v1358_v53 = vpop.f32.mrb[32].mxu1  ;;  %v4201_v54 = vpop.f32.mrb[33].mxu0 }
 0x1e3   : > { %v4207_v55 = vpop.f32.mrb[33].mxu1  ;;  %v1312_v56 = vpop.f32.mrb[34].mxu0 }
 0x1e4   : > { %v1659_v58 = vpack.c.bf16 %v1312_v56, %v1309_v52  ;;  %v1361_v59 = vpop.f32.mrb[34].mxu1  ;;  %v4202_v60 = vpop.f32.mrb[35].mxu0 }
 0x1e5   : > { %v1660_v62 = vpack.c.bf16 %v1361_v59, %v1358_v53  ;;  %v4208_v63 = vpop.f32.mrb[35].mxu1  ;;  %v4521_v59 = vld [vmem:[%s5819_s1 + $0x80] sm:$0xff]   ;;  %v4530_v60 = vld [vmem:[%s5820_s2 + $0x88] sm:$0xff]  }
 0x1e6   : > { %4248 = vmatmul.mubr.msk.bf16.vlgmr.msra.gmra.mrb[16].mxu0 %vm422_vm1, %v1659_v58  ;;  %v3046_v63 = vrot.slane %v4682_v10, 7 }
 0x1e7   : > { %4254 = vmatmul.mubr.msk.bf16.vlgmr.msra.gmra.mrb[16].mxu1 %vm422_vm1, %v1660_v62  ;;  %4258 = vmatpush3.bf16.msra.mxu0 %v4515_v57  ;;  %v3043_v62 = vrot.slane %v4659_v3, 1 }
 0x1e8   : > { %4264 = vmatpush3.bf16.msra.mxu1 %v4516_v61  ;;  %4259 = vmatprep.mubr.msk.bf16.mxu0 %vm4566_vm0, %v4565_v0  ;;  %v3042_v61 = vrot.slane %v4653_v1, 2 }
 0x1e9   : > { %v1407_v9 = vpop.f32.mrb[36].mxu0  ;;  %4265 = vmatprep.mubr.msk.bf16.mxu1 %vm4566_vm0, %v4565_v0  ;;  %4269 = vmatprep.subr.bf16.mxu0 %v4565_v0 }
 0x1ea   : > { %v1456_v12 = vpop.f32.mrb[36].mxu1  ;;  %v4213_v19 = vpop.f32.mrb[37].mxu0  ;;  %4275 = vmatprep.subr.bf16.mxu1 %v4565_v0 }
 0x1eb   : > { %v4219_v20 = vpop.f32.mrb[37].mxu1  ;;  %v1410_v27 = vpop.f32.mrb[38].mxu0  ;;  %v3052_v19 = vrot.slane %v4740_v23, 4 }
 0x1ec   : > { %v1661_v31 = vpack.c.bf16 %v1410_v27, %v1407_v9  ;;  %v1459_v32 = vpop.f32.mrb[38].mxu1  ;;  %v4214_v33 = vpop.f32.mrb[39].mxu0  ;;  %v3048_v9 = vrot.slane %v4704_v15, 6  ;;  %v3054_v20 = vrot.slane %v4748_v25, 3  ;;  %v3005_v27 = vrot.slane %v4653_v1, 1 }
 0x1ed   : > { %v1662_v35 = vpack.c.bf16 %v1459_v32, %v1456_v12  ;;  %v4220_v36 = vpop.f32.mrb[39].mxu1  ;;  %v3050_v12 = vrot.slane %v4712_v17, 5  ;;  %v3009_v32 = vrot.slane %v4682_v10, 6  ;;  %v3011_v33 = vrot.slane %v4704_v15, 5 }
 0x1ee   : > { %4260 = vmatmul.mubr.msk.bf16.vlgmr.msra.gmra.mrb[20].mxu0 %vm422_vm1, %v1661_v31  ;;  %v3044_v31 = vsel %vm2959_vm2, %v3043_v62, %v3042_v61  ;;  %v3006_v36 = vsel %vm2959_vm2, %v4659_v3, %v3005_v27  ;;  %v3322_v61 = vrot.slane %v4743_v24, 3  ;;  %v3324_v62 = vrot.slane %v4751_v26, 2 }
 0x1ef   : > { %4266 = vmatmul.mubr.msk.bf16.vlgmr.msra.gmra.mrb[20].mxu1 %vm422_vm1, %v1662_v35  ;;  %4270 = vmatpush3.bf16.msra.mxu0 %v4517_v28  ;;  %v3007_v28 = vrot.slane %v4669_v6, 7  ;;  %v3045_v35 = vsel %vm2962_vm3, %v4669_v6, %v3044_v31  ;;  %v3387_v27 = vrot.slane %v4672_v7, 1  ;;  %v3392_v31 = vrot.slane %v4715_v18, 6 }
 0x1f0   : > { %4276 = vmatpush3.bf16.msra.mxu1 %v4518_v34  ;;  %4271 = vmatprep.mubr.msk.bf16.mxu0 %vm4566_vm0, %v4565_v0  ;;  %v3013_v34 = vrot.slane %v4712_v17, 4 }
 0x1f1   : > { %v1505_v37 = vpop.f32.mrb[40].mxu0  ;;  %4277 = vmatprep.mubr.msk.bf16.mxu1 %vm4566_vm0, %v4565_v0  ;;  %4281 = vmatprep.subr.bf16.mxu0 %v4565_v0 }
 0x1f2   : > { %v1554_v38 = vpop.f32.mrb[40].mxu1  ;;  %v4225_v39 = vpop.f32.mrb[41].mxu0  ;;  %4287 = vmatprep.subr.bf16.mxu1 %v4565_v0 }
 0x1f3   : > { %v4231_v40 = vpop.f32.mrb[41].mxu1  ;;  %v1508_v41 = vpop.f32.mrb[42].mxu0  ;;  %v3047_v39 = vsel %vm2965_vm4, %v3046_v63, %v3045_v35  ;;  %v3396_v35 = vrot.slane %v4751_v26, 4 }
 0x1f4   : > { %v1663_v43 = vpack.c.bf16 %v1508_v41, %v1505_v37  ;;  %v1557_v44 = vpop.f32.mrb[42].mxu1  ;;  %v4226_v45 = vpop.f32.mrb[43].mxu0  ;;  %v3015_v37 = vrot.slane %v4740_v23, 3  ;;  %v3008_v40 = vsel %vm2962_vm3, %v3007_v28, %v3006_v36  ;;  %v3348_v41 = vrot.slane %v4656_v2, 2 }
 0x1f5   : > { %v1664_v47 = vpack.c.bf16 %v1557_v44, %v1554_v38  ;;  %v4232_v48 = vpop.f32.mrb[43].mxu1  ;;  %v3017_v38 = vrot.slane %v4748_v25, 2  ;;  %v3010_v44 = vsel %vm2965_vm4, %v3009_v32, %v3008_v40  ;;  %v3352_v45 = vrot.slane %v4685_v11, 7 }
 0x1f6   : > { %4272 = vmatmul.mubr.msk.bf16.vlgmr.msra.gmra.mrb[24].mxu0 %vm422_vm1, %v1663_v43  ;;  %v3049_v43 = vsel %vm2968_vm5, %v3048_v9, %v3047_v39  ;;  %v3012_v48 = vsel %vm2968_vm5, %v3011_v33, %v3010_v44  ;;  %v3390_v28 = vrot.slane %v4707_v16, 7  ;;  %v3080_v39 = vrot.slane %v4659_v3, 2 }
 0x1f7   : > { %4278 = vmatmul.mubr.msk.bf16.vlgmr.msra.gmra.mrb[24].mxu1 %vm422_vm1, %v1664_v47  ;;  %4282 = vmatpush3.bf16.msra.mxu0 %v4519_v42  ;;  %v3349_v42 = vrot.slane %v4666_v5, 1  ;;  %v3051_v47 = vsel %vm2971_vm6, %v3050_v12, %v3049_v43  ;;  %v3384_v12 = vrot.slane %v4656_v2, 3  ;;  %v3085_v43 = vrot.slane %v4704_v15, 7 }
 0x1f8   : > { %4288 = vmatpush3.bf16.msra.mxu1 %v4520_v46  ;;  %4283 = vmatprep.mubr.msk.bf16.mxu0 %vm4566_vm0, %v4565_v0  ;;  %v3354_v46 = vrot.slane %v4707_v16, 6 }
 0x1f9   : > { %v1603_v49 = vpop.f32.mrb[44].mxu0  ;;  %4289 = vmatprep.mubr.msk.bf16.mxu1 %vm4566_vm0, %v4565_v0  ;;  %4293 = vmatprep.subr.bf16.mxu0 %v4565_v0 }
 0x1fa   : > { %v1652_v50 = vpop.f32.mrb[44].mxu1  ;;  %v4237_v51 = vpop.f32.mrb[45].mxu0  ;;  %4299 = vmatprep.subr.bf16.mxu1 %v4565_v0 }
 0x1fb   : > { %v4243_v52 = vpop.f32.mrb[45].mxu1  ;;  %v1606_v53 = vpop.f32.mrb[46].mxu0  ;;  %v3053_v51 = vsel %vm2974_vm7, %v3052_v19, %v3051_v47  ;;  %v3385_v19 = vrot.slane %v4666_v5, 2  ;;  %v3087_v47 = vrot.slane %v4712_v17, 6 }
 0x1fc   : > { %v1665_v54 = vpack.c.bf16 %v1606_v53, %v1603_v49  ;;  %v1655_v55 = vpop.f32.mrb[46].mxu1  ;;  %v4238_v56 = vpop.f32.mrb[47].mxu0  ;;  %v3350_v49 = vsel %vm2959_vm2, %v3349_v42, %v3348_v41  ;;  %v3014_v52 = vsel %vm2971_vm6, %v3013_v34, %v3012_v48  ;;  %v3394_v34 = vrot.slane %v4743_v24, 5 }
 0x1fd   : > { %v1666_v57 = vpack.c.bf16 %v1655_v55, %v1652_v50  ;;  %v4244_v58 = vpop.f32.mrb[47].mxu1  ;;  %v3356_v50 = vrot.slane %v4715_v18, 5  ;;  %v3351_v53 = vsel %vm2962_vm3, %v4672_v7, %v3350_v49  ;;  %v3055_v55 = vsel %vm2977_vm8, %v3054_v20, %v3053_v51 }
 0x1fe   : > { %4284 = vmatmul.mubr.msk.bf16.vlgmr.msra.gmra.mrb[28].mxu0 %vm422_vm1, %v1665_v54  ;;  %v3358_v54 = vrot.slane %v4743_v24, 4  ;;  %v3016_v56 = vsel %vm2974_vm7, %v3015_v37, %v3014_v52  ;;  %v3360_v58 = vrot.slane %v4751_v26, 3  ;;  %3056 = vrot.lane.b32.xlu1 %v3055_v55, %s4567_s17  ;;  %v3386_v33 = vsel %vm2959_vm2, %v3385_v19, %v3384_v12 }
 0x1ff   : > { %4290 = vmatmul.mubr.msk.bf16.vlgmr.msra.gmra.mrb[28].mxu1 %vm422_vm1, %v1666_v57  ;;  %4294 = vmatpush3.bf16.msra.mxu0 %v4663_v4  ;;  %v4522_v4 = vld [vmem:[%s5819_s1 + $0x88] sm:$0xff]   ;;  %v3353_v57 = vsel %vm2965_vm4, %v3352_v45, %v3351_v53  ;;  %v3388_v37 = vsel %vm2962_vm3, %v3387_v27, %v3386_v33  ;;  %v3082_v42 = vrot.slane %v4669_v6, 1  ;;  %v3091_v51 = vrot.slane %v4748_v25, 4  ;;  %v4532_v33 = vld [vmem:[%s5820_s2 + $0x98] sm:$0xff]  }
 0x200   : > { %4300 = vmatpush3.bf16.msra.mxu1 %v4676_v8  ;;  %4295 = vmatprep.mubr.msk.bf16.mxu0 %vm4566_vm0, %v4565_v0  ;;  %v4523_v8 = vld [vmem:[%s5819_s1 + $0x90] sm:$0xff]   ;;  %v3389_v41 = vsel %vm2965_vm4, %v4685_v11, %v3388_v37  ;;  %v3421_v55 = vrot.slane %v4666_v5, 3 }
 0x201   : > { %4301 = vmatprep.mubr.msk.bf16.mxu1 %vm4566_vm0, %v4565_v0  ;;  %4305 = vmatprep.subr.bf16.mxu0 %v4565_v0  ;;  %v3391_v45 = vsel %vm2968_vm5, %v3390_v28, %v3389_v41  ;;  %v4533_v41 = vld [vmem:[%s5820_s2 + $0xa0] sm:$0xff]  }
 0x202   : > { %4311 = vmatprep.subr.bf16.mxu1 %v4565_v0  ;;  %v3393_v48 = vsel %vm2971_vm6, %v3392_v31, %v3391_v45  ;;  %v4534_v45 = vld [vmem:[%s5820_s2 + $0xa8] sm:$0xff]  }
 0x203   : > { %v3395_v52 = vsel %vm2974_vm7, %v3394_v34, %v3393_v48 }
 0x206   : > { %4296 = vmatmul.mubr.msk.bf16.vlgmr.msra.gmra.mrb[48].mxu0 %vm422_vm1, %v4521_v59  ;;  %v3018_v59 = vsel %vm2977_vm8, %v3017_v38, %v3016_v56  ;;  %v3079_v38 = vrot.slane %v4653_v1, 3  ;;  %v3397_v56 = vsel %vm2977_vm8, %v3396_v35, %v3395_v52 }
 0x207   : > { %4302 = vmatmul.mubr.msk.bf16.vlgmr.msra.gmra.mrb[48].mxu1 %vm422_vm1, %v4522_v4  ;;  %4306 = vmatpush3.bf16.msra.mxu0 %v4693_v13  ;;  %v4524_v13 = vld [vmem:[%s5819_s1 + $0x98] sm:$0xff]   ;;  %v3355_v4 = vsel %vm2968_vm5, %v3354_v46, %v3353_v57 }
 0x208   : > { %4312 = vmatpush3.bf16.msra.mxu1 %v4699_v14  ;;  %4307 = vmatprep.mubr.msk.bf16.mxu0 %vm4566_vm0, %v4565_v0  ;;  %v4525_v14 = vld [vmem:[%s5819_s1 + $0xa0] sm:$0xff]   ;;  %v3081_v46 = vsel %vm2959_vm2, %v3080_v39, %v3079_v38 }
 0x209   : > { %4313 = vmatprep.mubr.msk.bf16.mxu1 %vm4566_vm0, %v4565_v0  ;;  %4317 = vmatprep.subr.bf16.mxu0 %v4565_v0  ;;  %v3083_v49 = vsel %vm2962_vm3, %v3082_v42, %v3081_v46 }
 0x20a   : > { %4323 = vmatprep.subr.bf16.mxu1 %v4565_v0  ;;  %3019 = vrot.lane.b32.xlu0 %v3018_v59, %s4568_s19  ;;  %v3084_v53 = vsel %vm2965_vm4, %v4682_v10, %v3083_v49  ;;  %v3425_v59 = vrot.slane %v4685_v11, 1 }
 0x20b   : > { %v3086_v57 = vsel %vm2968_vm5, %v3085_v43, %v3084_v53  ;;  %v4535_v53 = vld [vmem:[%s5820_s2 + $0xb0] sm:$0xff]  }
 0x20e   : > { %4308 = vmatmul.mubr.msk.bf16.vlgmr.msra.gmra.mrb[52].mxu0 %vm422_vm1, %v4523_v8  ;;  %v3312_v8 = vrot.slane %v4656_v2, 1 }
 0x20f   : > { %4314 = vmatmul.mubr.msk.bf16.vlgmr.msra.gmra.mrb[52].mxu1 %vm422_vm1, %v4524_v13  ;;  %4318 = vmatpush3.bf16.msra.mxu0 %v4732_v21  ;;  %v4526_v21 = vld [vmem:[%s5819_s1 + $0xa8] sm:$0xff]   ;;  %v3314_v13 = vrot.slane %v4672_v7, 7 }
 0x210   : > { %4324 = vmatpush3.bf16.msra.mxu1 %v4736_v22  ;;  %4319 = vmatprep.mubr.msk.bf16.mxu0 %vm4566_vm0, %v4565_v0  ;;  %v4527_v22 = vld [vmem:[%s5819_s1 + $0xb0] sm:$0xff]  }
 0x211   : > { %4325 = vmatprep.mubr.msk.bf16.mxu1 %vm4566_vm0, %v4565_v0  ;;  %4329 = vmatprep.subr.bf16.mxu0 %v4565_v0 }
 0x212   : > { %4335 = vmatprep.subr.bf16.mxu1 %v4565_v0 }
 0x216   : > { %4320 = vmatmul.mubr.msk.bf16.vlgmr.msra.gmra.mrb[56].mxu0 %vm422_vm1, %v4525_v14  ;;  %v3357_v14 = vsel %vm2971_vm6, %v3356_v50, %v3355_v4  ;;  %v3089_v50 = vrot.slane %v4740_v23, 5  ;;  %v3088_v4 = vsel %vm2971_vm6, %v3087_v47, %v3086_v57  ;;  %v4536_v57 = vld [vmem:[%s5820_s2 + $0xb8] sm:$0xff]  }
 0x217   : > { %4326 = vmatmul.mubr.msk.bf16.vlgmr.msra.gmra.mrb[56].mxu1 %vm422_vm1, %v4526_v21  ;;  %4330 = vmatpush3.bf16.msra.mxu0 %v4768_v29  ;;  %v4528_v29 = vld [vmem:[%s5819_s1 + $0xb8] sm:$0xff]   ;;  %v3316_v21 = vrot.slane %v4685_v11, 6 }
 0x218   : > { %4336 = vmatpush3.bf16.msra.mxu1 %v4772_v30  ;;  %4331 = vmatprep.mubr.msk.bf16.mxu0 %vm4566_vm0, %v4565_v0  ;;  %v4529_v30 = vld [vmem:[%s5820_s2 + $0x80] sm:$0xff]  }
 0x219   : > { %4337 = vmatprep.mubr.msk.bf16.mxu1 %vm4566_vm0, %v4565_v0  ;;  %4341 = vmatprep.subr.bf16.mxu0 %v4565_v0 }
 0x21a   : > { %4347 = vmatprep.subr.bf16.mxu1 %v4565_v0 }
 0x21e   : > { %4332 = vmatmul.mubr.msk.bf16.vlgmr.msra.gmra.mrb[60].mxu0 %vm422_vm1, %v4527_v22  ;;  %v3318_v22 = vrot.slane %v4707_v16, 5 }
 0x21f   : > { %4338 = vmatmul.mubr.msk.bf16.vlgmr.msra.gmra.mrb[60].mxu1 %vm422_vm1, %v4528_v29  ;;  %4343 = vmatprep.mubr.msk.bf16.mxu0 %vm4566_vm0, %v4565_v0  ;;  %v3320_v29 = vrot.slane %v4715_v18, 4 }
 0x220   : > { %4349 = vmatprep.mubr.msk.bf16.mxu1 %vm4566_vm0, %v4565_v0  ;;  %4342 = vmatpush3.bf16.msra.mxu0 %v4529_v30  ;;  %v3359_v30 = vsel %vm2974_vm7, %v3358_v54, %v3357_v14  ;;  %v3420_v54 = vrot.slane %v4656_v2, 4  ;;  %v3430_v2 = vrot.slane %v4743_v24, 6  ;;  %v3121_v24 = vrot.slane %v4682_v10, 1 }
 0x221   : > { %4348 = vmatpush3.bf16.msra.mxu1 %v4530_v60  ;;  %4353 = vmatprep.subr.bf16.mxu0 %v4565_v0  ;;  %v3313_v60 = vsel %vm2959_vm2, %v4666_v5, %v3312_v8  ;;  %v3361_v63 = vsel %vm2977_vm8, %v3360_v58, %v3359_v30  ;;  %v3423_v58 = vrot.slane %v4672_v7, 2  ;;  %v3090_v5 = vsel %vm2974_vm7, %v3089_v50, %v3088_v4 }
 0x222   : > { %4359 = vmatprep.subr.bf16.mxu1 %v4565_v0  ;;  %v3315_v9 = vsel %vm2962_vm3, %v3314_v13, %v3313_v60  ;;  %3362 = vrot.lane.b32.xlu1 %v3361_v63, %s4567_s17  ;;  %v3422_v8 = vsel %vm2959_vm2, %v3421_v55, %v3420_v54  ;;  %v3428_v13 = vrot.slane %v4715_v18, 7  ;;  %v3116_v7 = vrot.slane %v4653_v1, 4 }
 0x223   : > { %v3317_v20 = vsel %vm2965_vm4, %v3316_v21, %v3315_v9  ;;  %v3424_v14 = vsel %vm2962_vm3, %v3423_v58, %v3422_v8  ;;  %v3432_v21 = vrot.slane %v4751_v26, 5  ;;  %v3092_v11 = vsel %vm2977_vm8, %v3091_v51, %v3090_v5 }
 0x224   : > { %v3319_v32 = vsel %vm2968_vm5, %v3318_v22, %v3317_v20  ;;  %v3426_v22 = vsel %vm2965_vm4, %v3425_v59, %v3424_v14  ;;  %v3119_v30 = vrot.slane %v4669_v6, 2  ;;  %v3124_v1 = vrot.slane %v4712_v17, 7 }
 0x225   : > { %v3321_v36 = vsel %vm2971_vm6, %v3320_v29, %v3319_v32  ;;  %v3117_v29 = vrot.slane %v4659_v3, 3  ;;  %v3427_v18 = vsel %vm2968_vm5, %v4707_v16, %v3426_v22  ;;  %v3126_v3 = vrot.slane %v4740_v23, 6 }
 0x226   : > { %v3323_v40 = vsel %vm2974_vm7, %v3322_v61, %v3321_v36  ;;  %3398 = vrot.lane.b32.xlu1 %v3397_v56, %s4569_s20  ;;  %v3429_v60 = vsel %vm2971_vm6, %v3428_v13, %v3427_v18  ;;  %v3128_v16 = vrot.slane %v4748_v25, 5  ;;  %v4531_v25 = vld [vmem:[%s5820_s2 + $0x90] sm:$0xff]  }
 0x227   : > { %v3325_v44 = vsel %vm2977_vm8, %v3324_v62, %v3323_v40  ;;  %v3118_v26 = vsel %vm2959_vm2, %v3117_v29, %v3116_v7  ;;  %v3431_v61 = vsel %vm2974_vm7, %v3430_v2, %v3429_v60  ;;  %v5215_v29 = vld [vmem:[%s4650_s18 + $0x8] sm:$0xff] }
 0x228   : > { %3326 = vrot.lane.b32.xlu0 %v3325_v44, %s4568_s19  ;;  %v3120_v62 = vsel %vm2962_vm3, %v3119_v30, %v3118_v26  ;;  %v3433_v6 = vsel %vm2977_vm8, %v3432_v21, %v3431_v61  ;;  %v5219_v30 = vld [vmem:[%s4650_s18 + $0x18] sm:$0xff]  ;;  %v5227_v26 = vld [vmem:[%s4650_s18 + $0x10] sm:$0xff]  ;;  %v5231_v61 = vld [vmem:[%s4650_s18 + $0x28] sm:$0xff] }
 0x229   : > { %v3122_v63 = vsel %vm2965_vm4, %v3121_v24, %v3120_v62  ;;  %v3457_v18 = vrot.slane %v5219_v30, 4  ;;  %v5223_v24 = vld [vmem:[%s4650_s18] sm:$0xff]  ;;  %v3459_v62 = vrot.slane %v5231_v61, 3 }
 0x22a   : > { %3434 = vrot.lane.b32.xlu1 %v3433_v6, %s4570_s21  ;;  %v3123_v10 = vsel %vm2968_vm5, %v4704_v15, %v3122_v63  ;;  %v3153_v60 = vrot.slane %v5223_v24, 5 }
 0x22b   : > { %v3125_v17 = vsel %vm2971_vm6, %v3124_v1, %v3123_v10  ;;  %v3154_v1 = vrot.slane %v5227_v26, 4 }
 0x22c   : > { %3093 = vrot.lane.b32.xlu0 %v3092_v11, %s4569_s20  ;;  %v3127_v9 = vsel %vm2974_vm7, %v3126_v3, %v3125_v17  ;;  %v5235_v3 = vld [vmem:[%s4650_s18 + $0x20] sm:$0xff] }
 0x22d   : > { %v3129_v12 = vsel %vm2977_vm8, %v3128_v16, %v3127_v9  ;;  %v3156_v6 = vrot.slane %v5235_v3, 3  ;;  %v5240_v16 = vld [vmem:[%s4650_s18 + $0x38] sm:$0xff]  ;;  %v3155_v17 = vsel %vm2959_vm2, %v3154_v1, %v3153_v60  ;;  %v5245_v9 = vld [vmem:[%s4650_s18 + $0x30] sm:$0xff] }
 0x22e   : > { %v3461_v10 = vrot.slane %v5240_v16, 2 }
 0x230   : > { %3130 = vrot.lane.b32.xlu0 %v3129_v12, %s4570_s21  ;;  %v3158_v12 = vrot.slane %v5245_v9, 2 }
 0x2d9   : > { %v2159_v23 = vpop.f32.mrb[48].mxu0 }
 0x2da   : > { %v2208_v19 = vpop.f32.mrb[48].mxu1  ;;  %v4297_v20 = vpop.f32.mrb[49].mxu0 }
 0x2db   : > { %v4303_v27 = vpop.f32.mrb[49].mxu1  ;;  %v2162_v28 = vpop.f32.mrb[50].mxu0 }
 0x2dc   : > { %v2509_v31 = vpack.c.bf16 %v2162_v28, %v2159_v23  ;;  %v2211_v32 = vpop.f32.mrb[50].mxu1  ;;  %v4298_v15 = vpop.f32.mrb[51].mxu0  ;;  %v3157_v27 = vsel %vm2962_vm3, %v3156_v6, %v3155_v17  ;;  %v5255_v28 = vld [vmem:[%s4650_s18 + $0x40] sm:$0xff]  ;;  %v3531_v6 = vrot.slane %v5231_v61, 5  ;;  %v3533_v17 = vrot.slane %v5240_v16, 4 }
 0x2dd   : > { %v2510_v34 = vpack.c.bf16 %v2211_v32, %v2208_v19  ;;  %v4304_v35 = vpop.f32.mrb[51].mxu1  ;;  %v5250_v19 = vld [vmem:[%s4650_s18 + $0x48] sm:$0xff]  ;;  %v3159_v32 = vsel %vm2965_vm4, %v3158_v12, %v3157_v27  ;;  %v3492_v15 = vrot.slane %v5215_v29, 6 }
 0x2de   : > { %4344 = vmatmul.mubr.msk.bf16.vlgmr.msra.gmra.mrb[16].mxu0 %vm422_vm1, %v2509_v31  ;;  %v3463_v20 = vrot.slane %v5250_v19, 1  ;;  %v5264_v35 = vld [vmem:[%s4650_s18 + $0x68] sm:$0xff]  ;;  %v3535_v12 = vrot.slane %v5250_v19, 3 }
 0x2df   : > { %4350 = vmatmul.mubr.msk.bf16.vlgmr.msra.gmra.mrb[16].mxu1 %vm422_vm1, %v2510_v34  ;;  %4354 = vmatpush3.bf16.msra.mxu0 %v4531_v25  ;;  %v3160_v25 = vrot.slane %v5255_v28, 1 }
 0x2e0   : > { %4360 = vmatpush3.bf16.msra.mxu1 %v4532_v33  ;;  %4355 = vmatprep.mubr.msk.bf16.mxu0 %vm4566_vm0, %v4565_v0  ;;  %v3493_v33 = vrot.slane %v5219_v30, 5 }
 0x2e1   : > { %v2257_v36 = vpop.f32.mrb[52].mxu0  ;;  %4361 = vmatprep.mubr.msk.bf16.mxu1 %vm4566_vm0, %v4565_v0  ;;  %4365 = vmatprep.subr.bf16.mxu0 %v4565_v0 }
 0x2e2   : > { %v2306_v37 = vpop.f32.mrb[52].mxu1  ;;  %v4309_v38 = vpop.f32.mrb[53].mxu0  ;;  %4371 = vmatprep.subr.bf16.mxu1 %v4565_v0 }
 0x2e3   : > { %v4315_v39 = vpop.f32.mrb[53].mxu1  ;;  %v2260_v40 = vpop.f32.mrb[54].mxu0  ;;  %v5269_v38 = vld [vmem:[%s4650_s18 + $0x60] sm:$0xff] }
 0x2e4   : > { %v2511_v42 = vpack.c.bf16 %v2260_v40, %v2257_v36  ;;  %v2309_v43 = vpop.f32.mrb[54].mxu1  ;;  %v4310_v44 = vpop.f32.mrb[55].mxu0  ;;  %v3466_v36 = vrot.slane %v5264_v35, 7  ;;  %v3163_v39 = vrot.slane %v5269_v38, 7  ;;  %v5273_v40 = vld [vmem:[%s4650_s18 + $0x58] sm:$0xff] }
 0x2e5   : > { %v2512_v46 = vpack.c.bf16 %v2309_v43, %v2306_v37  ;;  %v4316_v47 = vpop.f32.mrb[55].mxu1  ;;  %v3161_v37 = vsel %vm2968_vm5, %v3160_v25, %v3159_v32  ;;  %v5282_v44 = vld [vmem:[%s4650_s18 + $0x50] sm:$0xff]  ;;  %v3537_v27 = vrot.slane %v5273_v40, 2  ;;  %v3539_v25 = vrot.slane %v5264_v35, 1 }
 0x2e6   : > { %4356 = vmatmul.mubr.msk.bf16.vlgmr.msra.gmra.mrb[20].mxu0 %vm422_vm1, %v2511_v42  ;;  %v5278_v42 = vld [vmem:[%s4650_s18 + $0x78] sm:$0xff] }
 0x2e7   : > { %4362 = vmatmul.mubr.msk.bf16.vlgmr.msra.gmra.mrb[20].mxu1 %vm422_vm1, %v2512_v46  ;;  %4366 = vmatpush3.bf16.msra.mxu0 %v4533_v41  ;;  %v3468_v43 = vrot.slane %v5278_v42, 6  ;;  %v5287_v46 = vld [vmem:[%s4650_s18 + $0x70] sm:$0xff]  ;;  %s4571_s18 = smov 80  }
 0x2e8   : > { %4372 = vmatpush3.bf16.msra.mxu1 %v4534_v45  ;;  %4367 = vmatprep.mubr.msk.bf16.mxu0 %vm4566_vm0, %v4565_v0  ;;  %v3162_v45 = vsel %vm2971_vm6, %v5282_v44, %v3161_v37  ;;  %v3165_v47 = vrot.slane %v5287_v46, 6  ;;  %v3230_v37 = vrot.slane %v5235_v3, 5 }
 0x2e9   : > { %v2355_v48 = vpop.f32.mrb[56].mxu0  ;;  %4373 = vmatprep.mubr.msk.bf16.mxu1 %vm4566_vm0, %v4565_v0  ;;  %4377 = vmatprep.subr.bf16.mxu0 %v4565_v0 }
 0x2ea   : > { %v2404_v49 = vpop.f32.mrb[56].mxu1  ;;  %v4321_v50 = vpop.f32.mrb[57].mxu0  ;;  %4383 = vmatprep.subr.bf16.mxu1 %v4565_v0 }
 0x2eb   : > { %v4327_v51 = vpop.f32.mrb[57].mxu1  ;;  %v2358_v52 = vpop.f32.mrb[58].mxu0  ;;  %v3494_v50 = vsel %vm2959_vm2, %v3493_v33, %v3492_v15  ;;  %v3227_v15 = vrot.slane %v5223_v24, 7  ;;  %v3228_v33 = vrot.slane %v5227_v26, 6 }
 0x2ec   : > { %v2513_v54 = vpack.c.bf16 %v2358_v52, %v2355_v48  ;;  %v2407_v55 = vpop.f32.mrb[58].mxu1  ;;  %v4322_v56 = vpop.f32.mrb[59].mxu0  ;;  %v3495_v51 = vrot.slane %v5231_v61, 4 }
 0x2ed   : > { %v2514_v58 = vpack.c.bf16 %v2407_v55, %v2404_v49  ;;  %v4328_v59 = vpop.f32.mrb[59].mxu1  ;;  %v3164_v49 = vsel %vm2974_vm7, %v3163_v39, %v3162_v45  ;;  %v3499_v55 = vrot.slane %v5250_v19, 2  ;;  %v3232_v39 = vrot.slane %v5245_v9, 4 }
 0x2ee   : > { %4368 = vmatmul.mubr.msk.bf16.vlgmr.msra.gmra.mrb[24].mxu0 %vm422_vm1, %v2513_v54  ;;  %v3497_v54 = vrot.slane %v5240_v16, 3  ;;  %v3496_v56 = vsel %vm2962_vm3, %v3495_v51, %v3494_v50  ;;  %v3191_v59 = vrot.slane %v5227_v26, 5  ;;  %v3234_v45 = vrot.slane %v5255_v28, 3 }
 0x2ef   : > { %4374 = vmatmul.mubr.msk.bf16.vlgmr.msra.gmra.mrb[24].mxu1 %vm422_vm1, %v2514_v58  ;;  %4378 = vmatpush3.bf16.msra.mxu0 %v4535_v53  ;;  %v3166_v53 = vsel %vm2977_vm8, %v3165_v47, %v3164_v49  ;;  %v3190_v58 = vrot.slane %v5223_v24, 6  ;;  %v3236_v47 = vrot.slane %v5282_v44, 2  ;;  %v3238_v50 = vrot.slane %v5269_v38, 1 }
 0x2f0   : > { %4384 = vmatpush3.bf16.msra.mxu1 %v4536_v57  ;;  %4379 = vmatprep.mubr.msk.bf16.mxu0 %vm4566_vm0, %v4565_v0  ;;  %v3501_v57 = vrot.slane %v5273_v40, 1 }
 0x2f1   : > { %v2453_v4 = vpop.f32.mrb[60].mxu0  ;;  %4385 = vmatprep.mubr.msk.bf16.mxu1 %vm4566_vm0, %v4565_v0  ;;  %v3456_v0 = vrot.slane %v5215_v29, 5  ;;  %3167 = vrot.lane.b32.xlu0 %v3166_v53, %s4571_s18  ;;  %vm3581_vm0 = vcmask 1043456  }
 0x2f2   : > { %v2502_v8 = vpop.f32.mrb[60].mxu1  ;;  %v4333_v13 = vpop.f32.mrb[61].mxu0 }
 0x2f3   : > { %v4339_v2 = vpop.f32.mrb[61].mxu1  ;;  %v2456_v5 = vpop.f32.mrb[62].mxu0  ;;  %v3458_v63 = vsel %vm2959_vm2, %v3457_v18, %v3456_v0  ;;  %v3193_v13 = vrot.slane %v5235_v3, 4  ;;  %v3202_v0 = vrot.slane %v5287_v46, 7  ;;  %v3528_v18 = vrot.slane %v5215_v29, 7 }
 0x2f4   : > { %v2515_v14 = vpack.c.bf16 %v2456_v5, %v2453_v4  ;;  %v2505_v21 = vpop.f32.mrb[62].mxu1  ;;  %v4334_v7 = vpop.f32.mrb[63].mxu0  ;;  %v3460_v23 = vsel %vm2962_vm3, %v3459_v62, %v3458_v63  ;;  %v3498_v4 = vsel %vm2965_vm4, %v3497_v54, %v3496_v56  ;;  %v3195_v2 = vrot.slane %v5245_v9, 3 }
 0x2f5   : > { %v2516_v11 = vpack.c.bf16 %v2505_v21, %v2502_v8  ;;  %v4340_v22 = vpop.f32.mrb[63].mxu1  ;;  %v3462_v31 = vsel %vm2965_vm4, %v3461_v10, %v3460_v23  ;;  %v3504_v8 = vrot.slane %v5278_v42, 7  ;;  %v3500_v5 = vsel %vm2968_vm5, %v3499_v55, %v3498_v4 }
 0x2f6   : > { %4380 = vmatmul.mubr.msk.bf16.vlgmr.msra.gmra.mrb[28].mxu0 %vm422_vm1, %v2515_v14  ;;  %v3464_v34 = vsel %vm2968_vm5, %v3463_v20, %v3462_v31  ;;  %v3192_v14 = vsel %vm2959_vm2, %v3191_v59, %v3190_v58  ;;  %v3197_v21 = vrot.slane %v5255_v28, 2  ;;  %v3199_v7 = vrot.slane %v5282_v44, 1  ;;  %v3057_v58 = vpop.permute.xlu1 %3056 }
 0x2f7   : > { %4386 = vmatmul.mubr.msk.bf16.vlgmr.msra.gmra.mrb[28].mxu1 %vm422_vm1, %v2516_v11  ;;  %v3465_v41 = vsel %vm2971_vm6, %v5273_v40, %v3464_v34  ;;  %v3502_v11 = vsel %vm2971_vm6, %v3501_v57, %v3500_v5  ;;  %v3194_v22 = vsel %vm2962_vm3, %v3193_v13, %v3192_v14  ;;  %v3529_v62 = vrot.slane %v5219_v30, 6  ;;  %v3020_v13 = vpop.permute.xlu0 %3019 }
 0x2f8   : > { %v3467_v48 = vsel %vm2974_vm7, %v3466_v36, %v3465_v41  ;;  %v3503_v60 = vsel %vm2974_vm7, %v5264_v35, %v3502_v11  ;;  %v3196_v1 = vsel %vm2965_vm4, %v3195_v2, %v3194_v22  ;;  %v2958_v59 = vrot.slane %v5227_v26, 7 }
 0x2f9   : > { %v3469_v52 = vsel %vm2977_vm8, %v3468_v43, %v3467_v48  ;;  %v3505_v63 = vsel %vm2977_vm8, %v3504_v8, %v3503_v60  ;;  %v3198_v10 = vsel %vm2968_vm5, %v3197_v21, %v3196_v1  ;;  %v3530_v20 = vsel %vm2959_vm2, %v3529_v62, %v3528_v18 }
 0x2fa   : > { %3470 = vrot.lane.b32.xlu1 %v3469_v52, %s4571_s18  ;;  %v3200_v23 = vsel %vm2971_vm6, %v3199_v7, %v3198_v10  ;;  %v3532_v32 = vsel %vm2962_vm3, %v3531_v6, %v3530_v20  ;;  %v3229_v43 = vsel %vm2959_vm2, %v3228_v33, %v3227_v15  ;;  %v2961_v4 = vrot.slane %v5235_v3, 6  ;;  %v386_v15 = vld [vmem:[%s5821_s3 + $0x8] sm:$0xff] }
 0x2fb   : > { %v3201_v31 = vsel %vm2974_vm7, %v5269_v38, %v3200_v23  ;;  %v3534_v36 = vsel %vm2965_vm4, %v3533_v17, %v3532_v32  ;;  %v3231_v49 = vsel %vm2962_vm3, %v3230_v37, %v3229_v43  ;;  %v2964_v8 = vrot.slane %v5245_v9, 5  ;;  %v388_v37 = vld [vmem:[%s5821_s3 + $0x18] sm:$0xff] }
 0x2fc   : > { %v3203_v34 = vsel %vm2977_vm8, %v3202_v0, %v3201_v31  ;;  %v3536_v41 = vsel %vm2968_vm5, %v3535_v12, %v3534_v36  ;;  %v3233_v52 = vsel %vm2965_vm4, %v3232_v39, %v3231_v49  ;;  %v2967_v2 = vrot.slane %v5255_v28, 4  ;;  %v3327_v0 = vpop.permute.xlu0 %3326  ;;  %v387_v31 = vld [vmem:[%s5821_s3 + $0x10] sm:$0xff] }
 0x2fd   : > { %3204 = vrot.lane.b32.xlu0 %v3203_v34, %s4572_s16  ;;  %v3538_v48 = vsel %vm2971_vm6, %v3537_v27, %v3536_v41  ;;  %v3235_v54 = vsel %vm2968_vm5, %v3234_v45, %v3233_v52  ;;  %v2970_v5 = vrot.slane %v5282_v44, 3  ;;  %v2960_v14 = vsel %vm2959_vm2, %v2958_v59, %v5223_v24  ;;  %v3363_v44 = vpop.permute.xlu1 %3362 }
 0x2fe   : > { %3506 = vrot.lane.b32.xlu1 %v3505_v63, %s4572_s16  ;;  %v3540_v51 = vsel %vm2974_vm7, %v3539_v25, %v3538_v48  ;;  %v3237_v55 = vsel %vm2971_vm6, %v3236_v47, %v3235_v54  ;;  %v3272_v21 = vrot.slane %v5219_v30, 7  ;;  %v3274_v7 = vrot.slane %v5231_v61, 6  ;;  %v385_v25 = vld [vmem:[%s5821_s3] sm:$0xff] }
 0x2ff   : > { %v3541_v53 = vsel %vm2977_vm8, %v5278_v42, %v3540_v51  ;;  %v3239_v56 = vsel %vm2974_vm7, %v3238_v50, %v3237_v55  ;;  %v3276_v11 = vrot.slane %v5240_v16, 5  ;;  %v2973_v26 = vrot.slane %v5269_v38, 2 }
 0x300   : > { %v3240_v57 = vsel %vm2977_vm8, %v5287_v46, %v3239_v56  ;;  %v2963_v3 = vsel %vm2962_vm3, %v2961_v4, %v2960_v14  ;;  %v3278_v9 = vrot.slane %v5250_v19, 4  ;;  %v2976_v22 = vrot.slane %v5287_v46, 1  ;;  %v3094_v6 = vpop.permute.xlu0 %3093 }
 0x301   : > { %3241 = vrot.lane.b32.xlu0 %v3240_v57, %s4573_s22  ;;  %v2966_v28 = vsel %vm2965_vm4, %v2964_v8, %v2963_v3  ;;  %v3273_v24 = vsel %vm2959_vm2, %v3272_v21, %v5215_v29  ;;  %v3280_v30 = vrot.slane %v5273_v40, 3  ;;  %v3282_v38 = vrot.slane %v5264_v35, 2  ;;  %v3399_v62 = vpop.permute.xlu1 %3398 }
 0x302   : > { %3542 = vrot.lane.b32.xlu1 %v3541_v53, %s4573_s22  ;;  %v2969_v61 = vsel %vm2968_vm5, %v2967_v2, %v2966_v28  ;;  %v3275_v16 = vsel %vm2962_vm3, %v3274_v7, %v3273_v24  ;;  %v3284_v46 = vrot.slane %v5278_v42, 1  ;;  %v4574_v63 = vmov 0   ;;  %v389_v2 = vld [vmem:[%s5821_s3 + $0x20] sm:$0xff] }
 0x303   : > { %v2972_v18 = vsel %vm2971_vm6, %v2970_v5, %v2969_v61  ;;  %v3277_v19 = vsel %vm2965_vm4, %v3276_v11, %v3275_v16  ;;  %3679 = vmatprep.mubr.bf16.mxu1 %v4574_v63  ;;  %3620 = vmatprep.mubr.bf16.mxu0 %v4574_v63  ;;  %v391_v11 = vld [vmem:[%s5821_s3 + $0x30] sm:$0xff] }
 0x304   : > { %v2975_v60 = vsel %vm2974_vm7, %v2973_v26, %v2972_v18  ;;  %v3279_v29 = vsel %vm2968_vm5, %v3278_v9, %v3277_v19  ;;  %4487 = vset.pattern.permute.xlu0 %v4574_v63  ;;  %4488 = vset.pattern.permute.xlu1 %v4574_v63  ;;  %v3131_v10 = vpop.permute.xlu0 %3130  ;;  %v392_v19 = vld [vmem:[%s5821_s3 + $0x38] sm:$0xff] }
 0x305   : > { %v2978_v40 = vsel %vm2977_vm8, %v2976_v22, %v2975_v60  ;;  %v3281_v1 = vsel %vm2971_vm6, %v3280_v30, %v3279_v29  ;;  %v3435_v17 = vpop.permute.xlu1 %3434 }
 0x306   : > { %2980 = vst.msk [vmem:[#allocation2] sm:$0xff] %vm422_vm1, %v2978_v40  ;;  %v3283_v35 = vsel %vm2974_vm7, %v3282_v38, %v3281_v1 }
 0x307   : > { %3023 = vst.msk [vmem:[#allocation2] sm:$0xff] %vm3022_vm9, %v3020_v13  ;;  %v3285_v42 = vsel %vm2977_vm8, %v3284_v46, %v3283_v35 }
 0x308   : > { %3287 = vst.msk [vmem:[#allocation2 + $0x8] sm:$0xff] %vm422_vm1, %v3285_v42 }
 0x309   : > { %3060 = vst.msk [vmem:[#allocation2] sm:$0xff] %vm3059_vm10, %v3057_v58 }
 0x30a   : > { %3329 = vst.msk [vmem:[#allocation2 + $0x8] sm:$0xff] %vm3022_vm9, %v3327_v0 }
 0x30b   : > { %3097 = vst.msk [vmem:[#allocation2] sm:$0xff] %vm3096_vm11, %v3094_v6 }
 0x30c   : > { %3365 = vst.msk [vmem:[#allocation2 + $0x8] sm:$0xff] %vm3059_vm10, %v3363_v44  ;;  %v390_v44 = vld [vmem:[%s5821_s3 + $0x28] sm:$0xff] }
 0x30d   : > { %3134 = vst.msk [vmem:[#allocation2] sm:$0xff] %vm3133_vm12, %v3131_v10 }
 0x30e   : > { %3401 = vst.msk [vmem:[#allocation2 + $0x8] sm:$0xff] %vm3096_vm11, %v3399_v62 }
 0x30f   : > { %3437 = vst.msk [vmem:[#allocation2 + $0x8] sm:$0xff] %vm3133_vm12, %v3435_v17 }
 0x363   : > { %v3168_v23 = vpop.permute.xlu0 %3167 }
 0x364   : > { %3171 = vst.msk [vmem:[#allocation2] sm:$0xff] %vm3170_vm13, %v3168_v23 }
 0x36c   : > { %v3471_v12 = vpop.permute.xlu1 %3470 }
 0x36d   : > { %3473 = vst.msk [vmem:[#allocation2 + $0x8] sm:$0xff] %vm3170_vm13, %v3471_v12 }
 0x36f   : > { %v3205_v27 = vpop.permute.xlu0 %3204 }
 0x370   : > { %v3507_v20 = vpop.permute.xlu1 %3506  ;;  %3208 = vst.msk [vmem:[#allocation2] sm:$0xff] %vm3207_vm14, %v3205_v27 }
 0x371   : > { %3509 = vst.msk [vmem:[#allocation2 + $0x8] sm:$0xff] %vm3207_vm14, %v3507_v20 }
 0x373   : > { %v3242_v13 = vpop.permute.xlu0 %3241 }
 0x374   : > { %v3543_v57 = vpop.permute.xlu1 %3542  ;;  %3245 = vst.msk [vmem:[#allocation2] sm:$0xff] %vm5829_vm15, %v3242_v13 }
 0x375   : > { %3545 = vst.msk [vmem:[#allocation2 + $0x8] sm:$0xff] %vm5829_vm15, %v3543_v57  ;;  %vm3577_vm15 = vcmask 64512  }
 0x3b1   : > { %v2577_v32 = vpop.f32.mrb[16].mxu0 }
 0x3b2   : > { %v5415_v33 = vadd.f32 %v2577_v32, %v385_v25  ;;  %v2627_v34 = vpop.f32.mrb[16].mxu1  ;;  %v4345_v36 = vpop.f32.mrb[17].mxu0 }
 0x3b3   : > { %v5420_v39 = vadd.f32 %v2627_v34, %v387_v31  ;;  %v4351_v41 = vpop.f32.mrb[17].mxu1  ;;  %v2580_v43 = vpop.f32.mrb[18].mxu0 }
 0x3b4   : > { %v5422_v45 = vadd.f32 %v2580_v43, %v386_v15  ;;  %v2630_v47 = vpop.f32.mrb[18].mxu1  ;;  %v4346_v48 = vpop.f32.mrb[19].mxu0  ;;  %v3209_v49 = vrot.slane %v5415_v33, 6  ;;  %v3024_v50 = vrot.slane %v5415_v33, 1  ;;  %v3061_v51 = vrot.slane %v5415_v33, 2 }
 0x3b5   : > { %v5427_v52 = vadd.f32 %v2630_v47, %v388_v37  ;;  %v4352_v53 = vpop.f32.mrb[19].mxu1  ;;  %v3210_v54 = vrot.slane %v5420_v39, 5  ;;  %v3062_v55 = vrot.slane %v5420_v39, 1  ;;  %v3098_v56 = vrot.slane %v5415_v33, 3  ;;  %v393_v47 = vld [vmem:[%s5821_s3 + $0x40] sm:$0xff] }
 0x3b6   : > { %v3510_v58 = vrot.slane %v5422_v45, 6  ;;  %v3025_v59 = vsel %vm2959_vm2, %v5420_v39, %v3024_v50  ;;  %v3330_v4 = vrot.slane %v5422_v45, 1  ;;  %v3366_v8 = vrot.slane %v5422_v45, 2  ;;  %v395_v53 = vld [vmem:[%s5821_s3 + $0x50] sm:$0xff] }
 0x3b7   : > { %v3211_v5 = vsel %vm2959_vm2, %v3210_v54, %v3209_v49  ;;  %v3511_v14 = vrot.slane %v5427_v52, 5  ;;  %v3063_v21 = vsel %vm2959_vm2, %v3062_v55, %v3061_v51  ;;  %v3367_v7 = vrot.slane %v5427_v52, 1 }
 0x3b8   : > { %v3331_v26 = vsel %vm2959_vm2, %v5427_v52, %v3330_v4  ;;  %v3099_v3 = vrot.slane %v5420_v39, 2  ;;  %v3402_v9 = vrot.slane %v5422_v45, 3  ;;  %v3403_v22 = vrot.slane %v5427_v52, 2 }
 0x3b9   : > { %v2677_v28 = vpop.f32.mrb[20].mxu0  ;;  %v3512_v24 = vsel %vm2959_vm2, %v3511_v14, %v3510_v58  ;;  %v3368_v30 = vsel %vm2959_vm2, %v3367_v7, %v3366_v8  ;;  %v3135_v0 = vrot.slane %v5415_v33, 4  ;;  %v3136_v61 = vrot.slane %v5420_v39, 3  ;;  %v396_v7 = vld [vmem:[%s5821_s3 + $0x58] sm:$0xff] }
 0x3ba   : > { %v5461_v16 = vadd.f32 %v2677_v28, %v389_v2  ;;  %v2727_v38 = vpop.f32.mrb[20].mxu1  ;;  %v4357_v18 = vpop.f32.mrb[21].mxu0  ;;  %v3100_v46 = vsel %vm2959_vm2, %v3099_v3, %v3098_v56  ;;  %v5468_v60 = vsel %vm2959_vm2, %v3403_v22, %v3402_v9  ;;  %v3438_v29 = vrot.slane %v5422_v45, 4 }
 0x3bb   : > { %v5471_v40 = vadd.f32 %v2727_v38, %v391_v11  ;;  %v4363_v1 = vpop.f32.mrb[21].mxu1  ;;  %v2680_v62 = vpop.f32.mrb[22].mxu0  ;;  %v5474_v6 = vsel %vm2959_vm2, %v3136_v61, %v3135_v0  ;;  %v3439_v35 = vrot.slane %v5427_v52, 3  ;;  %v3172_v42 = vrot.slane %v5415_v33, 5 }
 0x3bc   : > { %v5478_v10 = vadd.f32 %v2680_v62, %v390_v44  ;;  %v2730_v17 = vpop.f32.mrb[22].mxu1  ;;  %v4358_v12 = vpop.f32.mrb[23].mxu0  ;;  %v3212_v23 = vrot.slane %v5461_v16, 4  ;;  %v3026_v20 = vrot.slane %v5461_v16, 7  ;;  %v3064_v27 = vsel %vm2962_vm3, %v5461_v16, %v3063_v21 }
 0x3bd   : > { %v5484_v25 = vadd.f32 %v2730_v17, %v392_v19  ;;  %v4364_v31 = vpop.f32.mrb[23].mxu1  ;;  %v3214_v32 = vrot.slane %v5471_v40, 3  ;;  %v3028_v15 = vrot.slane %v5471_v40, 6  ;;  %v3065_v34 = vrot.slane %v5471_v40, 7 }
 0x3be   : > { %v3213_v36 = vsel %vm2962_vm3, %v3212_v23, %v3211_v5  ;;  %v3513_v37 = vrot.slane %v5478_v10, 4  ;;  %v3027_v41 = vsel %vm2962_vm3, %v3026_v20, %v3025_v59  ;;  %v3332_v43 = vrot.slane %v5478_v10, 7  ;;  %v394_v59 = vld [vmem:[%s5821_s3 + $0x48] sm:$0xff]  ;;  %v397_v31 = vld [vmem:[%s5821_s3 + $0x60] sm:$0xff] }
 0x3bf   : > { %v3215_v48 = vsel %vm2965_vm4, %v3214_v32, %v3213_v36  ;;  %v3515_v49 = vrot.slane %v5484_v25, 3  ;;  %v3029_v50 = vsel %vm2965_vm4, %v3028_v15, %v3027_v41  ;;  %v3334_v51 = vrot.slane %v5484_v25, 6 }
 0x3c0   : > { %v3514_v54 = vsel %vm2962_vm3, %v3513_v37, %v3512_v24  ;;  %v3333_v55 = vsel %vm2962_vm3, %v3332_v43, %v3331_v26  ;;  %v3066_v56 = vsel %vm2965_vm4, %v3065_v34, %v3064_v27  ;;  %v3369_v57 = vsel %vm2962_vm3, %v5478_v10, %v3368_v30  ;;  %v399_v37 = vld [vmem:[%s5821_s3 + $0x70] sm:$0xff] }
 0x3c1   : > { %v2777_v58 = vpop.f32.mrb[24].mxu0  ;;  %v3516_v4 = vsel %vm2965_vm4, %v3515_v49, %v3514_v54  ;;  %v3335_v8 = vsel %vm2965_vm4, %v3334_v51, %v3333_v55  ;;  %v3370_v13 = vrot.slane %v5484_v25, 7  ;;  %v3101_v2 = vrot.slane %v5461_v16, 1 }
 0x3c2   : > { %v5515_v5 = vadd.f32 %v2777_v58, %v393_v47  ;;  %v2827_v14 = vpop.f32.mrb[24].mxu1  ;;  %v4369_v21 = vpop.f32.mrb[25].mxu0  ;;  %v3405_v11 = vrot.slane %v5478_v10, 1  ;;  %v3138_v26 = vrot.slane %v5461_v16, 2  ;;  %v3140_v3 = vrot.slane %v5471_v40, 1 }
 0x3c3   : > { %v5523_v9 = vadd.f32 %v2827_v14, %v395_v53  ;;  %v4375_v22 = vpop.f32.mrb[25].mxu1  ;;  %v2780_v28 = vpop.f32.mrb[26].mxu0  ;;  %v3371_v44 = vsel %vm2965_vm4, %v3370_v13, %v3369_v57  ;;  %v3102_v24 = vsel %vm2962_vm3, %v3101_v2, %v3100_v46  ;;  %v5528_v30 = vsel %vm2959_vm2, %v3439_v35, %v3438_v29 }
 0x3c4   : > { %v5530_v0 = vadd.f32 %v2780_v28, %v394_v59  ;;  %v2830_v61 = vpop.f32.mrb[26].mxu1  ;;  %v4370_v38 = vpop.f32.mrb[27].mxu0  ;;  %v3216_v18 = vrot.slane %v5515_v5, 2  ;;  %v3030_v19 = vrot.slane %v5515_v5, 5  ;;  %v3067_v1 = vrot.slane %v5515_v5, 6 }
 0x3c5   : > { %v5535_v62 = vadd.f32 %v2830_v61, %v396_v7  ;;  %v4376_v17 = vpop.f32.mrb[27].mxu1  ;;  %v3218_v12 = vrot.slane %v5523_v9, 1  ;;  %v3032_v46 = vrot.slane %v5523_v9, 4  ;;  %v3069_v29 = vrot.slane %v5523_v9, 5 }
 0x3c6   : > { %v3217_v35 = vsel %vm2968_vm5, %v3216_v18, %v3215_v48  ;;  %v3517_v23 = vrot.slane %v5530_v0, 2  ;;  %v3031_v20 = vsel %vm2968_vm5, %v3030_v19, %v3029_v50  ;;  %v3336_v27 = vrot.slane %v5530_v0, 5  ;;  %v398_v50 = vld [vmem:[%s5821_s3 + $0x68] sm:$0xff] }
 0x3c7   : > { %v3219_v32 = vsel %vm2971_vm6, %v3218_v12, %v3217_v35  ;;  %v3519_v15 = vrot.slane %v5535_v62, 1  ;;  %v3033_v34 = vsel %vm2971_vm6, %v3032_v46, %v3031_v20  ;;  %v3338_v36 = vrot.slane %v5535_v62, 4 }
 0x3c8   : > { %v3518_v41 = vsel %vm2968_vm5, %v3517_v23, %v3516_v4  ;;  %v3337_v43 = vsel %vm2968_vm5, %v3336_v27, %v3335_v8  ;;  %v3068_v47 = vsel %vm2968_vm5, %v3067_v1, %v3066_v56  ;;  %v3372_v48 = vrot.slane %v5530_v0, 6  ;;  %v400_v56 = vld [vmem:[%s5821_s3 + $0x78] sm:$0xff] }
 0x3c9   : > { %v2877_v49 = vpop.f32.mrb[28].mxu0  ;;  %v3520_v51 = vsel %vm2971_vm6, %v3519_v15, %v3518_v41  ;;  %v3339_v53 = vsel %vm2971_vm6, %v3338_v36, %v3337_v43  ;;  %v3070_v54 = vsel %vm2971_vm6, %v3069_v29, %v3068_v47  ;;  %v3374_v55 = vrot.slane %v5535_v62, 5 }
 0x3ca   : > { %v5565_v57 = vadd.f32 %v2877_v49, %v397_v31  ;;  %v2927_v58 = vpop.f32.mrb[28].mxu1  ;;  %v4381_v59 = vpop.f32.mrb[29].mxu0  ;;  %v3373_v4 = vsel %vm2968_vm5, %v3372_v48, %v3371_v44  ;;  %v3103_v8 = vsel %vm2965_vm4, %v5471_v40, %v3102_v24  ;;  %v3104_v13 = vrot.slane %v5515_v5, 7 }
 0x3cb   : > { %v5574_v2 = vadd.f32 %v2927_v58, %v399_v37  ;;  %v4387_v14 = vpop.f32.mrb[29].mxu1  ;;  %v2880_v21 = vpop.f32.mrb[30].mxu0  ;;  %v3375_v7 = vsel %vm2971_vm6, %v3374_v55, %v3373_v4  ;;  %v3106_v22 = vrot.slane %v5523_v9, 6  ;;  %v3406_v28 = vsel %vm2962_vm3, %v3405_v11, %v5468_v60 }
 0x3cc   : > { %v5580_v61 = vadd.f32 %v2880_v21, %v398_v50  ;;  %v2930_v38 = vpop.f32.mrb[30].mxu1  ;;  %v4382_v44 = vpop.f32.mrb[31].mxu0  ;;  %v3220_v24 = vsel %vm2974_vm7, %v5565_v57, %v3219_v32  ;;  %v3034_v18 = vrot.slane %v5565_v57, 3  ;;  %v3071_v19 = vrot.slane %v5565_v57, 4 }
 0x3cd   : > { %v5586_v1 = vadd.f32 %v2930_v38, %v400_v56  ;;  %v4388_v17 = vpop.f32.mrb[31].mxu1  ;;  %v3221_v12 = vrot.slane %v5574_v2, 7  ;;  %v3036_v46 = vrot.slane %v5574_v2, 2  ;;  %v3073_v60 = vrot.slane %v5574_v2, 3 }
 0x3ce   : > { %v3521_v11 = vsel %vm2974_vm7, %v5580_v61, %v3520_v51  ;;  %v3035_v29 = vsel %vm2974_vm7, %v3034_v18, %v3033_v34  ;;  %v3340_v35 = vrot.slane %v5580_v61, 3  ;;  %v3072_v23 = vsel %vm2974_vm7, %v3071_v19, %v3070_v54 }
 0x3cf   : > { %v3222_v20 = vsel %vm2977_vm8, %v3221_v12, %v3220_v24  ;;  %v3522_v27 = vrot.slane %v5586_v1, 7  ;;  %v3037_v31 = vsel %vm2977_vm8, %v3036_v46, %v3035_v29  ;;  %v3342_v32 = vrot.slane %v5586_v1, 2 }
 0x3d0   : > { %3223 = vrot.lane.b32.xlu0 %v3222_v20, %s4572_s16  ;;  %v3341_v15 = vsel %vm2974_vm7, %v3340_v35, %v3339_v53  ;;  %v3074_v36 = vsel %vm2977_vm8, %v3073_v60, %v3072_v23  ;;  %v3376_v34 = vrot.slane %v5580_v61, 4  ;;  %v3378_v37 = vrot.slane %v5586_v1, 3 }
 0x3d1   : > { %v3523_v41 = vsel %vm2977_vm8, %v3522_v27, %v3521_v11  ;;  %v3343_v43 = vsel %vm2977_vm8, %v3342_v32, %v3341_v15  ;;  %v3105_v47 = vsel %vm2968_vm5, %v3104_v13, %v3103_v8  ;;  %v3108_v48 = vrot.slane %v5565_v57, 5 }
 0x3d2   : > { %3524 = vrot.lane.b32.xlu1 %v3523_v41, %s4572_s16  ;;  %v3377_v49 = vsel %vm2974_vm7, %v3376_v34, %v3375_v7  ;;  %v3107_v50 = vsel %vm2971_vm6, %v3106_v22, %v3105_v47  ;;  %v3110_v51 = vrot.slane %v5574_v2, 4  ;;  %v3407_v53 = vsel %vm2965_vm4, %v5484_v25, %v3406_v28 }
 0x3d3   : > { %v3379_v54 = vsel %vm2977_vm8, %v3378_v37, %v3377_v49  ;;  %v3109_v55 = vsel %vm2974_vm7, %v3108_v48, %v3107_v50  ;;  %v3408_v58 = vrot.slane %v5530_v0, 7  ;;  %v3410_v59 = vrot.slane %v5535_v62, 6 }
 0x3d4   : > { %3038 = vrot.lane.b32.xlu0 %v3037_v31, %s4568_s19  ;;  %v3111_v56 = vsel %vm2977_vm8, %v3110_v51, %v3109_v55  ;;  %v3412_v4 = vrot.slane %v5580_v61, 5  ;;  %v3414_v8 = vrot.slane %v5586_v1, 4  ;;  %v3139_v13 = vsel %vm2962_vm3, %v3138_v26, %v5474_v6 }
 0x3d5   : > { %v3409_v14 = vsel %vm2968_vm5, %v3408_v58, %v3407_v53  ;;  %v3141_v21 = vsel %vm2965_vm4, %v3140_v3, %v3139_v13  ;;  %v3143_v7 = vrot.slane %v5523_v9, 7  ;;  %v3145_v22 = vrot.slane %v5565_v57, 6 }
 0x3d6   : > { %3344 = vrot.lane.b32.xlu1 %v3343_v43, %s4568_s19  ;;  %v3411_v28 = vsel %vm2971_vm6, %v3410_v59, %v3409_v14  ;;  %v3142_v38 = vsel %vm2968_vm5, %v5515_v5, %v3141_v21  ;;  %v3147_v44 = vrot.slane %v5574_v2, 5  ;;  %v3441_v6 = vrot.slane %v5478_v10, 2 }
 0x3d7   : > { %v3413_v26 = vsel %vm2974_vm7, %v3412_v4, %v3411_v28  ;;  %v3144_v24 = vsel %vm2971_vm6, %v3143_v7, %v3142_v38  ;;  %v3443_v3 = vrot.slane %v5484_v25, 1  ;;  %v3446_v18 = vrot.slane %v5535_v62, 7 }
 0x3d8   : > { %3075 = vrot.lane.b32.xlu0 %v3074_v36, %s4567_s17  ;;  %v3415_v19 = vsel %vm2977_vm8, %v3414_v8, %v3413_v26  ;;  %v3146_v17 = vsel %vm2974_vm7, %v3145_v22, %v3144_v24  ;;  %v3442_v12 = vsel %vm2962_vm3, %v3441_v6, %v5528_v30  ;;  %v3448_v46 = vrot.slane %v5580_v61, 6 }
 0x3d9   : > { %v3148_v60 = vsel %vm2977_vm8, %v3147_v44, %v3146_v17  ;;  %v3444_v11 = vsel %vm2965_vm4, %v3443_v3, %v3442_v12  ;;  %v3450_v29 = vrot.slane %v5586_v1, 5  ;;  %v3173_v35 = vrot.slane %v5420_v39, 4  ;;  %v5703_v17 = vld [vmem:[#allocation2 + $0x8] sm:$0xff] }
 0x3da   : > { %3380 = vrot.lane.b32.xlu1 %v3379_v54, %s4567_s17  ;;  %v3445_v23 = vsel %vm2968_vm5, %v5530_v0, %v3444_v11  ;;  %v3175_v20 = vrot.slane %v5461_v16, 3  ;;  %v3177_v27 = vrot.slane %v5471_v40, 2  ;;  %v3179_v30 = vrot.slane %v5515_v5, 1 }
 0x3db   : > { %v3447_v31 = vsel %vm2971_vm6, %v3446_v18, %v3445_v23  ;;  %v3174_v32 = vsel %vm2959_vm2, %v3173_v35, %v3172_v42  ;;  %v3182_v15 = vrot.slane %v5565_v57, 7  ;;  %v3184_v36 = vrot.slane %v5574_v2, 6 }
 0x3dc   : > { %3112 = vrot.lane.b32.xlu0 %v3111_v56, %s4569_s20  ;;  %v3449_v34 = vsel %vm2974_vm7, %v3448_v46, %v3447_v31  ;;  %v3176_v37 = vsel %vm2962_vm3, %v3175_v20, %v3174_v32  ;;  %v3474_v41 = vrot.slane %v5422_v45, 5  ;;  %v3475_v43 = vrot.slane %v5427_v52, 4 }
 0x3dd   : > { %v3451_v47 = vsel %vm2977_vm8, %v3450_v29, %v3449_v34  ;;  %v3178_v48 = vsel %vm2965_vm4, %v3177_v27, %v3176_v37  ;;  %v3477_v42 = vrot.slane %v5478_v10, 3  ;;  %v3479_v49 = vrot.slane %v5484_v25, 2  ;;  %v5710_v29 = vld [vmem:[#allocation2] sm:$0xff] }
 0x3de   : > { %3416 = vrot.lane.b32.xlu1 %v3415_v19, %s4569_s20  ;;  %v3180_v50 = vsel %vm2968_vm5, %v3179_v30, %v3178_v48  ;;  %v3476_v51 = vsel %vm2959_vm2, %v3475_v43, %v3474_v41  ;;  %v3481_v53 = vrot.slane %v5530_v0, 1  ;;  %v3484_v54 = vrot.slane %v5580_v61, 7 }
 0x3df   : > { %v3181_v55 = vsel %vm2971_vm6, %v5523_v9, %v3180_v50  ;;  %v3478_v58 = vsel %vm2962_vm3, %v3477_v42, %v3476_v51  ;;  %v3486_v59 = vrot.slane %v5586_v1, 6  ;;  %v3246_v56 = vrot.slane %v5415_v33, 7 }
 0x3e0   : > { %3149 = vrot.lane.b32.xlu0 %v3148_v60, %s4570_s21  ;;  %v3183_v4 = vsel %vm2974_vm7, %v3182_v15, %v3181_v55  ;;  %v3480_v8 = vsel %vm2965_vm4, %v3479_v49, %v3478_v58  ;;  %v3247_v13 = vrot.slane %v5420_v39, 6  ;;  %v3249_v14 = vrot.slane %v5461_v16, 5 }
 0x3e1   : > { %v3185_v21 = vsel %vm2977_vm8, %v3184_v36, %v3183_v4  ;;  %v3482_v7 = vsel %vm2968_vm5, %v3481_v53, %v3480_v8  ;;  %v3251_v22 = vrot.slane %v5471_v40, 4  ;;  %v3253_v28 = vrot.slane %v5515_v5, 3 }
 0x3e2   : > { %3452 = vrot.lane.b32.xlu1 %v3451_v47, %s4570_s21  ;;  %v3483_v38 = vsel %vm2971_vm6, %v5535_v62, %v3482_v7  ;;  %v3248_v44 = vsel %vm2959_vm2, %v3247_v13, %v3246_v56  ;;  %v3255_v6 = vrot.slane %v5523_v9, 2  ;;  %v3257_v26 = vrot.slane %v5565_v57, 1 }
 0x3e3   : > { %v3485_v24 = vsel %vm2974_vm7, %v3484_v54, %v3483_v38  ;;  %v3250_v3 = vsel %vm2962_vm3, %v3249_v14, %v3248_v44  ;;  %v3546_v18 = vrot.slane %v5422_v45, 7  ;;  %v3547_v19 = vrot.slane %v5427_v52, 6 }
 0x3e4   : > { %3186 = vrot.lane.b32.xlu0 %v3185_v21, %s4571_s18  ;;  %v3487_v12 = vsel %vm2977_vm8, %v3486_v59, %v3485_v24  ;;  %v3252_v46 = vsel %vm2965_vm4, %v3251_v22, %v3250_v3  ;;  %v3549_v60 = vrot.slane %v5478_v10, 5  ;;  %v3551_v11 = vrot.slane %v5484_v25, 4 }
 0x3e5   : > { %v3254_v35 = vsel %vm2968_vm5, %v3253_v28, %v3252_v46  ;;  %v3548_v23 = vsel %vm2959_vm2, %v3547_v19, %v3546_v18  ;;  %v3553_v20 = vrot.slane %v5530_v0, 3  ;;  %v3555_v27 = vrot.slane %v5535_v62, 2  ;;  %v3711_v28 = vld [vmem:[%s5827_s9] sm:$0xff] }
 0x3e6   : > { %3488 = vrot.lane.b32.xlu1 %v3487_v12, %s4571_s18  ;;  %v3256_v30 = vsel %vm2971_vm6, %v3255_v6, %v3254_v35  ;;  %v3550_v31 = vsel %vm2962_vm3, %v3549_v60, %v3548_v23  ;;  %v3557_v32 = vrot.slane %v5580_v61, 1  ;;  %v3631_v15 = vpack.c.bf16 %v5703_v17, %v5703_v17 }
 0x3e7   : > { %v3258_v36 = vsel %vm2974_vm7, %v3257_v26, %v3256_v30  ;;  %v3552_v34 = vsel %vm2965_vm4, %v3551_v11, %v3550_v31  ;;  %v3630_v37 = vpack.c.bf16 %v5710_v29, %v5710_v29  ;;  %v2989_v41 = vrot.slane %v5420_v39, 7 }
 0x3e8   : > { %v3259_v43 = vsel %vm2977_vm8, %v5574_v2, %v3258_v36  ;;  %v3554_v47 = vsel %vm2968_vm5, %v3553_v20, %v3552_v34  ;;  %3997 = vmatprep.subr.msk.bf16.mxu1 %vm3581_vm0, %v3631_v15  ;;  %v2991_v48 = vrot.slane %v5461_v16, 6  ;;  %v2993_v42 = vrot.slane %v5471_v40, 5  ;;  %v3629_v16 = vld [vmem:[%s5824_s6] sm:$0xf] }
 0x3e9   : > { %3260 = vrot.lane.b32.xlu0 %v3259_v43, %s4573_s22  ;;  %v3556_v49 = vsel %vm2971_vm6, %v3555_v27, %v3554_v47  ;;  %v3642_v50 = vsel %vm3581_vm0, %v3630_v37, 0  ;;  %v2990_v39 = vsel %vm2959_vm2, %v2989_v41, %v5415_v33  ;;  %v2995_v51 = vrot.slane %v5515_v5, 4  ;;  %v3568_v15 = vld [vmem:[%s5822_s4] sm:$0xf] }
 0x3ea   : > { %v3558_v53 = vsel %vm2974_vm7, %v3557_v32, %v3556_v49  ;;  %3648 = vmatpush1.bf16.msra.mxu1 %v3642_v50  ;;  %v2992_v40 = vsel %vm2962_vm3, %v2991_v48, %v2990_v39  ;;  %v2997_v54 = vrot.slane %v5523_v9, 3  ;;  %v3001_v55 = vrot.slane %v5574_v2, 1 }
 0x3eb   : > { %v3559_v58 = vsel %vm2977_vm8, %v5586_v1, %v3558_v53  ;;  %v2994_v33 = vsel %vm2965_vm4, %v2993_v42, %v2992_v40  ;;  %v2999_v5 = vrot.slane %v5565_v57, 2  ;;  %v3296_v59 = vrot.slane %v5427_v52, 7  ;;  %v3632_v52 = vld [vmem:[%s5825_s7] sm:$0xff] }
 0x3ec   : > { %3560 = vrot.lane.b32.xlu1 %v3559_v58, %s4573_s22  ;;  %v2996_v56 = vsel %vm2968_vm5, %v2995_v51, %v2994_v33  ;;  %v3298_v4 = vrot.slane %v5478_v10, 6  ;;  %v3300_v8 = vrot.slane %v5484_v25, 5  ;;  %v3302_v9 = vrot.slane %v5530_v0, 4  ;;  %v3571_v10 = vld [vmem:[%s5823_s5] sm:$0xff] }
 0x3ed   : > { %3998 = vmatmul.mubr.msk.bf16.vlgmr.msra.gmra.mrb[64].mxu1 %vm3577_vm15, %v3629_v16  ;;  %v2998_v2 = vsel %vm2971_vm6, %v2997_v54, %v2996_v56  ;;  %v3297_v13 = vsel %vm2959_vm2, %v3296_v59, %v5422_v45  ;;  %v3304_v57 = vrot.slane %v5535_v62, 3  ;;  %v3306_v14 = vrot.slane %v5580_v61, 2  ;;  %3635 = vperm.xlu0 %4487, %v3632_v52  }
 0x3ee   : > { %v3000_v25 = vsel %vm2974_vm7, %v2999_v5, %v2998_v2  ;;  %v3299_v0 = vsel %vm2962_vm3, %v3298_v4, %v3297_v13  ;;  %v3308_v62 = vrot.slane %v5586_v1, 1 }
 0x3ef   : > { %v3002_v21 = vsel %vm2977_vm8, %v3001_v55, %v3000_v25  ;;  %v3301_v45 = vsel %vm2965_vm4, %v3300_v8, %v3299_v0 }
 0x3f0   : > { %3004 = vst.msk [vmem:[#allocation3] sm:$0xff] %vm422_vm1, %v3002_v21  ;;  %v3303_v7 = vsel %vm2968_vm5, %v3302_v9, %v3301_v45  ;;  %3574 = vperm.xlu1 %4488, %v3571_v10  }
 0x3f1   : > { %v3305_v22 = vsel %vm2971_vm6, %v3304_v57, %v3303_v7  ;;  %v3708_v7 = vld [vmem:[%s5826_s8] sm:$0xf] }
 0x3f2   : > { %v3307_v61 = vsel %vm2974_vm7, %v3306_v14, %v3305_v22 }
 0x3f3   : > { %v3309_v38 = vsel %vm2977_vm8, %v3308_v62, %v3307_v61 }
 0x3f4   : > { %3311 = vst.msk [vmem:[#allocation3 + $0x8] sm:$0xff] %vm422_vm1, %v3309_v38  ;;  %3714 = vperm.xlu1 %4488, %v3711_v28   ;;  %vm5830_vm1 = vcmask 1048448  }
 0x3f5   : > { %vm5831_vm2 = vmmov %vm5830_vm1 }
 0x442   : > { %v3224_v44 = vpop.permute.xlu0 %3223 }
 0x444   : > { %v3525_v1 = vpop.permute.xlu1 %3524 }
 0x446   : > { %v3039_v6 = vpop.permute.xlu0 %3038 }
 0x447   : > { %3041 = vst.msk [vmem:[#allocation3] sm:$0xff] %vm3022_vm9, %v3039_v6 }
 0x448   : > { %v3345_v26 = vpop.permute.xlu1 %3344 }
 0x449   : > { %3347 = vst.msk [vmem:[#allocation3 + $0x8] sm:$0xff] %vm3022_vm9, %v3345_v26 }
 0x44a   : > { %v3076_v24 = vpop.permute.xlu0 %3075 }
 0x44b   : > { %3078 = vst.msk [vmem:[#allocation3] sm:$0xff] %vm3059_vm10, %v3076_v24 }
 0x44c   : > { %v3381_v3 = vpop.permute.xlu1 %3380 }
 0x44d   : > { %3383 = vst.msk [vmem:[#allocation3 + $0x8] sm:$0xff] %vm3059_vm10, %v3381_v3 }
 0x44e   : > { %v3113_v18 = vpop.permute.xlu0 %3112 }
 0x44f   : > { %3115 = vst.msk [vmem:[#allocation3] sm:$0xff] %vm3096_vm11, %v3113_v18 }
 0x450   : > { %v3417_v19 = vpop.permute.xlu1 %3416 }
 0x451   : > { %3419 = vst.msk [vmem:[#allocation3 + $0x8] sm:$0xff] %vm3096_vm11, %v3417_v19 }
 0x452   : > { %v3150_v12 = vpop.permute.xlu0 %3149 }
 0x453   : > { %3152 = vst.msk [vmem:[#allocation3] sm:$0xff] %vm3133_vm12, %v3150_v12 }
 0x454   : > { %v3453_v46 = vpop.permute.xlu1 %3452 }
 0x455   : > { %3455 = vst.msk [vmem:[#allocation3 + $0x8] sm:$0xff] %vm3133_vm12, %v3453_v46 }
 0x456   : > { %v3187_v60 = vpop.permute.xlu0 %3186 }
 0x457   : > { %3189 = vst.msk [vmem:[#allocation3] sm:$0xff] %vm3170_vm13, %v3187_v60 }
 0x458   : > { %3226 = vst.msk [vmem:[#allocation3] sm:$0xff] %vm3207_vm14, %v3224_v44  ;;  %v3489_v11 = vpop.permute.xlu1 %3488 }
 0x459   : > { %3491 = vst.msk [vmem:[#allocation3 + $0x8] sm:$0xff] %vm3170_vm13, %v3489_v11 }
 0x45a   : > { %3527 = vst.msk [vmem:[#allocation3 + $0x8] sm:$0xff] %vm3207_vm14, %v3525_v1 }
 0x45b   : > { %v3261_v35 = vpop.permute.xlu0 %3260 }
 0x45c   : > { %3263 = vst.msk [vmem:[#allocation3] sm:$0xff] %vm5830_vm1, %v3261_v35 }
 0x45e   : > { %v3561_v23 = vpop.permute.xlu1 %3560 }
 0x45f   : > { %3563 = vst.msk [vmem:[#allocation3 + $0x8] sm:$0xff] %vm5831_vm2, %v3561_v23 }
 0x463   : > { %v3566_v20 = vld [vmem:[#allocation3] sm:$0xff] }
 0x464   : > { %v3569_v27 = vpack.c.bf16 %v3566_v20, %v3566_v20 }
 0x466   : > { %v3567_v30 = vld [vmem:[#allocation3 + $0x8] sm:$0xff]  ;;  %v3583_v32 = vsel %vm3581_vm0, %v3569_v27, 0 }
 0x467   : > { %v3570_v31 = vpack.c.bf16 %v3567_v30, %v3567_v30 }
 0x469   : > { %3995 = vmatprep.subr.msk.bf16.mxu0 %vm3581_vm0, %v3570_v31 }
 0x46a   : > { %3589 = vmatpush1.bf16.msra.mxu0 %v3583_v32 }
 0x46c   : > { %v3636_v43 = vpop.permute.xlu0 %3635 }
 0x46d   : > { %3996 = vmatmul.mubr.msk.bf16.vlgmr.msra.gmra.mrb[64].mxu0 %vm3577_vm15, %v3568_v15 }
 0x46e   : > { %3758 = vmatprep.mubr.bf16.mxu0 %v4574_v63 }
 0x46f   : > { %v3575_v4 = vpop.permute.xlu1 %3574 }
 0x473   : > { %v3715_v22 = vpop.permute.xlu1 %3714 }
 0x4c0   : > { %v3681_v36 = vpop.f32.mrb[64].mxu1 }
 0x4c1   : > { %v3683_v34 = vpop.f32.mrb[65].mxu1  ;;  %v3682_v47 = vadd.f32 %v3681_v36, %v3636_v43 }
 0x4c2   : > { %v3685_v37 = vpop.f32.mrb[66].mxu1  ;;  %v3684_v48 = vadd.f32 %v3683_v34, %v3636_v43 }
 0x4c3   : > { %v3686_v41 = vpop.f32.mrb[67].mxu1  ;;  %v3690_v42 = vmul.f32 %v3682_v47, %v3682_v47  ;;  %v3688_v33 = vmul.f32 0.5, %v3682_v47 }
 0x4c4   : > { %v3691_v49 = vmul.f32 %v3684_v48, %v3684_v48  ;;  %v3689_v59 = vmul.f32 0.5, %v3684_v48 }
 0x4c5   : > { %v3692_v50 = vmul.f32 %v3690_v42, %v3682_v47 }
 0x4c6   : > { %v3693_v39 = vmul.f32 %v3691_v49, %v3684_v48 }
 0x4c7   : > { %v3694_v51 = vmul.f32 0.044715, %v3692_v50 }
 0x4c8   : > { %v3695_v53 = vmul.f32 0.044715, %v3693_v39 }
 0x4c9   : > { %v3696_v16 = vadd.f32 %v3694_v51, %v3682_v47 }
 0x4ca   : > { %v3697_v40 = vadd.f32 %v3695_v53, %v3684_v48 }
 0x4cb   : > { %v3698_v54 = vmul.f32 0.7978846, %v3696_v16 }
 0x4cc   : > { %v3699_v55 = vmul.f32 0.7978846, %v3697_v40 }
 0x4cd   : > { %4537 = vtanh.f32 %v3698_v54 }
 0x4ce   : > { %4539 = vtanh.f32 %v3699_v55 }
 0x4d7   : > { %v4538_v63 = vpop.eup %4537 }
 0x4d8   : > { %v4540_v58 = vpop.eup %4539  ;;  %v3702_v5 = vadd.f32 1.0, %v4538_v63 }
 0x4d9   : > { %v3703_v56 = vadd.f32 1.0, %v4540_v58 }
 0x4da   : > { %v3704_v2 = vmul.f32 %v3702_v5, %v3688_v33 }
 0x4db   : > { %v3705_v52 = vmul.f32 %v3703_v56, %v3689_v59 }
 0x540   : > { %v3622_v8 = vpop.f32.mrb[64].mxu0 }
 0x541   : > { %v3623_v9 = vadd.f32 %v3622_v8, %v3575_v4  ;;  %v3624_v13 = vpop.f32.mrb[65].mxu0 }
 0x542   : > { %v3625_v57 = vadd.f32 %v3624_v13, %v3575_v4  ;;  %v3626_v10 = vpop.f32.mrb[66].mxu0 }
 0x543   : > { %v3706_v25 = vmul.f32 %v3704_v2, %v3623_v9  ;;  %v3627_v0 = vpop.f32.mrb[67].mxu0 }
 0x544   : > { %v3707_v14 = vmul.f32 %v3705_v52, %v3625_v57 }
 0x545   : > { %v3709_v21 = vpack.c.bf16 %v3706_v25, %v3706_v25 }
 0x546   : > { %v3710_v45 = vpack.c.bf16 %v3707_v14, %v3707_v14 }
 0x547   : > { %v3721_v62 = vsel %vm3581_vm0, %v3709_v21, 0 }
 0x548   : > { %3999 = vmatprep.subr.msk.bf16.mxu0 %vm3581_vm0, %v3710_v45 }
 0x549   : > { %3727 = vmatpush1.bf16.msra.mxu0 %v3721_v62 }
 0x54c   : > { %4000 = vmatmul.mubr.msk.bf16.vlgmr.msra.gmra.mrb[68].mxu0 %vm3577_vm15, %v3708_v7 }
 0x61f   : > { %v3760_v28 = vpop.f32.mrb[68].mxu0 }
 0x620   : > { %v3761_v61 = vadd.f32 %v3760_v28, %v3715_v22  ;;  %v3762_v38 = vpop.f32.mrb[69].mxu0 }
 0x621   : > { %v3763_v44 = vadd.f32 %v3762_v38, %v3715_v22  ;;  %v3764_v1 = vpop.f32.mrb[70].mxu0 }
 0x622   : > { %v3767_v6 = vadd.f32 %v3761_v61, %v5710_v29  ;;  %v3765_v26 = vpop.f32.mrb[71].mxu0 }
 0x623   : > { %v3768_v24 = vadd.f32 %v3763_v44, %v5703_v17 }
 0x624   : > { %3769 = vst [vmem:[%s359_s30] sm:$0xff] %v3767_v6 }
 0x625   : > { %3770 = vst [vmem:[%s359_s30 + $0x8] sm:$0xff] %v3768_v24 }
 0x626 PF: > { %s20_s13 = sadd.s32 1, %s4563_s13  }
 0x627   : > { %p17_p4 = scmp.ge.s32.totalorder %s20_s13, 4  }
 0x629   :  { %19 = sbr.rel (!%p17_p4) target bundleno = 1 (0x1), region = 94 }

</bundles_post_ra>
